<compile_context>
chip_gen: v7x
topology: tpu7x:2x2x1
jax: 0.10.0
libtpu: 0.0.40
codegen_flags: <defaults>
</compile_context>

<pallas_src>
import functools
import math

import jax
import jax.numpy as jnp
from jax.experimental import pallas as pl
from jax.experimental.pallas import tpu as pltpu


def _layer_norm(x, w, b, eps=1e-5):
    mu = jnp.mean(x, axis=-1, keepdims=True)
    var = jnp.mean((x - mu) * (x - mu), axis=-1, keepdims=True)
    return (x - mu) * jax.lax.rsqrt(var + eps) * w + b


def _transformer_layer_kernel(
    q_ref, k_ref, v_ref,
    qw_ref, qb_ref, kw_ref, kb_ref, vw_ref, vb_ref,
    ow_ref, ob_ref, gam_ref,
    ln1w_ref, ln1b_ref, l1w_ref, l1b_ref, l2w_ref, l2b_ref,
    ln2w_ref, ln2b_ref,
    out_ref,
    *, n_heads, mask_k, zero_pad, apply_pos, approx_recip):
    f32 = jnp.float32
    cdt = qw_ref.dtype                      # MXU operand dtype (bf16 or f32)
    tq = q_ref.shape[1]                     # query-rows in this tile
    S = k_ref.shape[1]                      # full key/value length
    D = q_ref.shape[2]

    row0 = pl.program_id(1) * tq

    x_q = q_ref[0].astype(f32)              # (TQ, D) residual, f32
    x_q_c = x_q.astype(cdt)
    x_k_c = k_ref[0].astype(cdt)            # (S, D)
    x_v_c = v_ref[0].astype(cdt)            # (S, v_len)

    # Tile-local index matrices (query rows are global indices).
    row_g = row0 + jax.lax.broadcasted_iota(jnp.int32, (tq, S), 0)
    col = jax.lax.broadcasted_iota(jnp.int32, (tq, S), 1)
    attn_mask = col < (row_g + mask_k)                       # src_mask
    mask_f = attn_mask.astype(f32)
    pos_eff = jnp.abs(row_g.astype(f32) - col.astype(f32))   # |i - j|

    # Strict-upper key x key matrix: (p @ upper)[i,j] == disttot[i] - distcum[i,j].
    ka = jax.lax.broadcasted_iota(jnp.int32, (S, S), 0)
    kb = jax.lax.broadcasted_iota(jnp.int32, (S, S), 1)
    upper = (ka > kb).astype(f32).astype(cdt)

    neg_big = f32(-1e32)
    if zero_pad:
        keep_row = (row_g[:, :1] != 0).astype(f32)           # (TQ, 1)

    def head_body(h, acc):
        # Per-head projections; weights are packed (H, in, out) -> leading-axis index.
        qh = (jnp.dot(x_q_c, qw_ref[h], preferred_element_type=f32)
              + qb_ref[h]).astype(cdt)                        # (TQ, d_k), scale folded in
        kh = (jnp.dot(x_k_c, kw_ref[h], preferred_element_type=f32)
              + kb_ref[h]).astype(cdt)                        # (S, d_k)
        vh = (jnp.dot(x_v_c, vw_ref[h], preferred_element_type=f32)
              + vb_ref[h]).astype(cdt)                        # (S, d_v)

        scores = jax.lax.dot_general(
            qh, kh, (((1,), (1,)), ((), ())),
            preferred_element_type=f32)                       # (TQ, S)

        # --- distance statistics (torch.no_grad branch) ---
        s_masked = jnp.where(attn_mask, scores, neg_big)
        p = jnp.exp(s_masked - jnp.max(s_masked, axis=-1, keepdims=True))
        p = p * pl.reciprocal(jnp.sum(p, axis=-1, keepdims=True), approx=approx_recip)
        p = p * mask_f
        rest = jnp.dot(p.astype(cdt), upper, preferred_element_type=f32)
        dist_scores = jnp.sqrt(jnp.maximum(rest * pos_eff, 0.0))

        # gamma = -softplus(gammas[h]) (numerically stable softplus).
        g = gam_ref[h].astype(f32)                            # (1, 1)
        gamma_h = -(jnp.maximum(g, 0.0) + jnp.log(1.0 + jnp.exp(-jnp.abs(g))))
        total_effect = jnp.clip(jnp.exp(dist_scores * gamma_h), 1e-5, 1e5)

        sc = jnp.where(attn_mask, scores * total_effect, neg_big)
        e = jnp.exp(sc - jnp.max(sc, axis=-1, keepdims=True))
        probs = e * pl.reciprocal(jnp.sum(e, axis=-1, keepdims=True),
                                  approx=approx_recip)
        if zero_pad:
            probs = probs * keep_row

        oh = jnp.dot(probs.astype(cdt), vh, preferred_element_type=f32)   # (TQ, d_v)
        # Fused output projection: accumulate this head's slab of out_proj.
        return acc + jnp.dot(oh.astype(cdt), ow_ref[h],
                             preferred_element_type=f32)                  # (TQ, D)

    attn_out = jax.lax.fori_loop(0, n_heads, head_body,
                                 jnp.zeros((tq, D), f32),
                                 unroll=bool(n_heads <= 4))
    attn_out = attn_out + ob_ref[...]

    x = _layer_norm(x_q + attn_out, ln1w_ref[...], ln1b_ref[...])

    if apply_pos:
        hidden = jnp.maximum(
            jnp.dot(x.astype(cdt), l1w_ref[...], preferred_element_type=f32)
            + l1b_ref[...], 0.0)
        ff = (jnp.dot(hidden.astype(cdt), l2w_ref[...], preferred_element_type=f32)
              + l2b_ref[...])
        x = _layer_norm(x + ff, ln2w_ref[...], ln2b_ref[...])

    out_ref[0] = x.astype(out_ref.dtype)


def transformer_layer_forward(params, mask, query, key, values, apply_pos=True,
                              compute_dtype=jnp.bfloat16, tq=None):
    """mask: python int (0 or 1), same semantics as the PyTorch module."""
    B, S, D = query.shape
    Vl = values.shape[-1]
    H = params["n_heads"]
    d_ff = params["l1w"].shape[1]
    d_k, d_v = D // H, Vl // H
    cdt = jnp.dtype(compute_dtype)
    f32 = jnp.float32

    # Query-row tile size (flash-style tiling of the attention body).
    if tq is None:
        if S <= 256:
            tq = S
        elif S % 256 == 0:
            tq = 256
        elif S % 128 == 0:
            tq = 128
        else:
            tq = S
    assert S % tq == 0
    n_qt = S // tq

    # kq_same: reuse k_linear for q.
    qw = params["kw"] if params["qw"] is None else params["qw"]
    qb = params["kb"] if params["qb"] is None else params["qb"]
    scale = 1.0 / math.sqrt(d_k)            # fold 1/sqrt(d_k) into the q projection

    def pack_in_head(w, b, din, dh):
        # (din, H*dh) -> (H, din, dh);  bias (1, H*dh) -> (H, 1, dh)
        wp = w.reshape(din, H, dh).transpose(1, 0, 2)
        bp = b.reshape(1, H, dh).transpose(1, 0, 2)
        return wp, bp

    qw_p, qb_p = pack_in_head(qw * scale, qb * scale, D, d_k)
    kw_p, kb_p = pack_in_head(params["kw"], params["kb"], D, d_k)
    vw_p, vb_p = pack_in_head(params["vw"], params["vb"], Vl, d_v)
    ow_p = params["ow"].reshape(H, d_v, D)              # rows grouped by head
    gam_p = params["gammas"].reshape(H, 1, 1).astype(f32)

    weights = (
        qw_p.astype(cdt), qb_p.astype(f32),
        kw_p.astype(cdt), kb_p.astype(f32),
        vw_p.astype(cdt), vb_p.astype(f32),
        ow_p.astype(cdt), params["ob"].astype(f32), gam_p,
        params["ln1w"].astype(f32), params["ln1b"].astype(f32),
        params["l1w"].astype(cdt), params["l1b"].astype(f32),
        params["l2w"].astype(cdt), params["l2b"].astype(f32),
        params["ln2w"].astype(f32), params["ln2b"].astype(f32),
    )

    kernel = functools.partial(
        _transformer_layer_kernel,
        n_heads=H, mask_k=int(mask), zero_pad=(int(mask) == 0),
        apply_pos=bool(apply_pos), approx_recip=(cdt == jnp.dtype(jnp.bfloat16)))

    q_spec = pl.BlockSpec((1, tq, D), lambda b, t: (b, t, 0))
    k_spec = pl.BlockSpec((1, S, D), lambda b, t: (b, 0, 0))
    v_spec = pl.BlockSpec((1, S, Vl), lambda b, t: (b, 0, 0))
    out_spec = pl.BlockSpec((1, tq, D), lambda b, t: (b, t, 0))

    def full_spec(w):
        nd = w.ndim
        return pl.BlockSpec(w.shape, lambda b, t, nd=nd: (0,) * nd)

    # Cost estimate (bf16-aware weight bytes; weights are grid-invariant -> read once).
    weight_bytes = sum(int(w.size) * w.dtype.itemsize for w in weights)
    flops_per_b = (
        2 * S * D * D                       # q projection
        + 2 * n_qt * S * D * D              # k projection (recomputed per query tile)
        + 2 * n_qt * S * Vl * Vl            # v projection (recomputed per query tile)
        + 2 * S * S * D                     # q.k^T over all heads
        + 2 * H * S * S * S                 # p @ strict-upper (distance stats)
        + 2 * S * S * Vl                    # probs @ v
        + 2 * S * Vl * D                    # fused output projection
        + 4 * S * D * d_ff                  # FFN
    )
    cost = pl.CostEstimate(
        flops=int(B * flops_per_b),
        transcendentals=int(3 * B * H * S * S),
        bytes_accessed=int(4 * B * S * (3 * D + Vl) + weight_bytes))

    # VMEM budget: double-buffered activation blocks + weights + per-head temporaries.
    act_bytes = 2 * 4 * (2 * tq * D + S * D + S * Vl)
    tmp_bytes = cdt.itemsize * S * S + 4 * 8 * tq * S + 4 * tq * d_ff
    est = 2 * weight_bytes + act_bytes + tmp_bytes
    vmem_limit = int(min(100 * 2**20, max(32 * 2**20, 2 * est)))

    return pl.pallas_call(
        kernel,
        out_shape=jax.ShapeDtypeStruct((B, S, D), query.dtype),
        grid=(B, n_qt),
        in_specs=[q_spec, k_spec, v_spec] + [full_spec(w) for w in weights],
        out_specs=out_spec,
        compiler_params=pltpu.CompilerParams(
            dimension_semantics=("parallel", "parallel"),
            vmem_limit_bytes=vmem_limit),
        cost_estimate=cost,
    )(query, key, values, *weights)


def init_params(key, d_model, v_len, d_ff, n_heads, kq_same, dtype=jnp.float32):
    ks = jax.random.split(key, 8)

    def xavier(k, shape):
        fan_in, fan_out = shape
        bound = math.sqrt(6.0 / (fan_in + fan_out))
        return jax.random.uniform(k, shape, dtype, -bound, bound)

    sqrt3 = math.sqrt(3.0)
    return dict(
        n_heads=n_heads,
        kw=xavier(ks[0], (d_model, d_model)), kb=jnp.zeros((1, d_model), dtype),
        qw=None if kq_same else xavier(ks[1], (d_model, d_model)),
        qb=None if kq_same else jnp.zeros((1, d_model), dtype),
        vw=xavier(ks[2], (v_len, v_len)), vb=jnp.zeros((1, v_len), dtype),
        ow=xavier(ks[3], (v_len, d_model)), ob=jnp.zeros((1, d_model), dtype),
        gammas=jax.random.uniform(ks[4], (1, n_heads), dtype, -sqrt3, sqrt3),
        ln1w=jnp.ones((1, d_model), dtype), ln1b=jnp.zeros((1, d_model), dtype),
        l1w=xavier(ks[5], (d_model, d_ff)),
        l1b=0.05 * jax.random.normal(ks[6], (1, d_ff), dtype),
        l2w=xavier(ks[7], (d_ff, d_model)), l2b=jnp.zeros((1, d_model), dtype),
        ln2w=jnp.ones((1, d_model), dtype), ln2b=jnp.zeros((1, d_model), dtype),
    )


def _ref_forward(params, mask, query, key, values, apply_pos=True):
    """Pure-JAX reference replicating the PyTorch math (eval mode), f32."""
    HIGH = jax.lax.Precision.HIGHEST
    B, S, D = query.shape
    v_len = values.shape[-1]
    H = params["n_heads"]
    d_k, d_v = D // H, v_len // H
    qw = params["kw"] if params["qw"] is None else params["qw"]
    qb = params["kb"] if params["qb"] is None else params["qb"]

    def lin(x, w, b):
        return jnp.einsum("bsd,df->bsf", x, w, precision=HIGH) + b

    q = lin(query, qw, qb).reshape(B, S, H, d_k).transpose(0, 2, 1, 3)
    k = lin(key, params["kw"], params["kb"]).reshape(B, S, H, d_k).transpose(0, 2, 1, 3)
    v = lin(values, params["vw"], params["vb"]).reshape(B, S, H, d_v).transpose(0, 2, 1, 3)

    scores = jnp.einsum("bhqd,bhkd->bhqk", q, k, precision=HIGH) / math.sqrt(d_k)
    i = jnp.arange(S)[:, None]
    j = jnp.arange(S)[None, :]
    am = (j < i + mask)[None, None]
    pos_eff = jnp.abs(i - j).astype(jnp.float32)[None, None]

    s_ = jnp.where(am, scores, -1e32)
    s_ = jax.nn.softmax(s_, axis=-1) * am.astype(jnp.float32)
    distcum = jnp.cumsum(s_, axis=-1)
    disttot = jnp.sum(s_, axis=-1, keepdims=True)
    dist_scores = jnp.sqrt(jnp.maximum((disttot - distcum) * pos_eff, 0.0))

    g = params["gammas"]
    gamma = -(jnp.maximum(g, 0.0) + jnp.log1p(jnp.exp(-jnp.abs(g))))[0]   # (H,)
    gamma = gamma[None, :, None, None]
    total_effect = jnp.clip(jnp.exp(dist_scores * gamma), 1e-5, 1e5)

    scores = jnp.where(am, scores * total_effect, -1e32)
    scores = jax.nn.softmax(scores, axis=-1)
    if mask == 0:
        scores = scores.at[:, :, 0, :].set(0.0)
    out = jnp.einsum("bhqk,bhkd->bhqd", scores, v, precision=HIGH)
    concat = out.transpose(0, 2, 1, 3).reshape(B, S, v_len)
    attn_out = lin(concat, params["ow"], params["ob"])

    def ln(x, w, b, eps=1e-5):
        mu = jnp.mean(x, axis=-1, keepdims=True)
        var = jnp.mean((x - mu) ** 2, axis=-1, keepdims=True)
        return (x - mu) * jax.lax.rsqrt(var + eps) * w + b

    x = ln(query + attn_out, params["ln1w"], params["ln1b"])
    if apply_pos:
        hidden = jnp.maximum(lin(x, params["l1w"], params["l1b"]), 0.0)
        ff = lin(hidden, params["l2w"], params["l2b"])
        x = ln(x + ff, params["ln2w"], params["ln2b"])
    return x


if __name__ == "__main__":
    key = jax.random.PRNGKey(0)
    k_p, k_q, k_k, k_v = jax.random.split(key, 4)

    batch, seq = 2, 8
    d_model, v_len, d_ff, n_heads = 32, 64, 64, 4
    kq_same = False

    params = init_params(k_p, d_model, v_len, d_ff, n_heads, kq_same)
    query = jax.random.normal(k_q, (batch, seq, d_model), jnp.float32)
    key_x = jax.random.normal(k_k, (batch, seq, d_model), jnp.float32)
    values = jax.random.normal(k_v, (batch, seq, v_len), jnp.float32)

    for mask in (0, 1):   # mask=0 -> strictly-causal + zero_pad; mask=1 -> causal incl. diag
        ref = _ref_forward(params, mask, query, key_x, values, apply_pos=True)

        # f32 compute path: tight tolerance.
        out32 = transformer_layer_forward(params, mask, query, key_x, values,
                                          apply_pos=True, compute_dtype=jnp.float32)
        out32 = jax.block_until_ready(out32)
        assert out32.shape == (batch, seq, d_model), out32.shape
        assert out32.dtype == query.dtype
        err32 = float(jnp.max(jnp.abs(out32 - ref)))
        assert err32 < 5e-3, f"mask={mask} f32: max abs err {err32}"

        # bf16 MXU-operand path (default): looser tolerance (bf16 rounding).
        outbf = transformer_layer_forward(params, mask, query, key_x, values,
                                          apply_pos=True, compute_dtype=jnp.bfloat16)
        outbf = jax.block_until_ready(outbf)
        errbf = float(jnp.max(jnp.abs(outbf - ref)))
        assert errbf < 1e-1, f"mask={mask} bf16: max abs err {errbf}"

    print("KERNEL_OK")
</pallas_src>

<mosaic_0001>
module attributes {stable_mosaic.version = 11 : i64} {
  func.func @_transformer_layer_kernel(%arg0: i32, %arg1: i32, %arg2: memref<1x8x32xf32, #tpu.memory_space<vmem>>, %arg3: memref<1x8x32xf32, #tpu.memory_space<vmem>>, %arg4: memref<1x8x64xf32, #tpu.memory_space<vmem>>, %arg5: memref<4x32x8xf32, #tpu.memory_space<vmem>>, %arg6: memref<4x1x8xf32, #tpu.memory_space<vmem>>, %arg7: memref<4x32x8xf32, #tpu.memory_space<vmem>>, %arg8: memref<4x1x8xf32, #tpu.memory_space<vmem>>, %arg9: memref<4x64x16xf32, #tpu.memory_space<vmem>>, %arg10: memref<4x1x16xf32, #tpu.memory_space<vmem>>, %arg11: memref<4x16x32xf32, #tpu.memory_space<vmem>>, %arg12: memref<1x32xf32, #tpu.memory_space<vmem>>, %arg13: memref<4x1x1xf32, #tpu.memory_space<vmem>>, %arg14: memref<1x32xf32, #tpu.memory_space<vmem>>, %arg15: memref<1x32xf32, #tpu.memory_space<vmem>>, %arg16: memref<32x64xf32, #tpu.memory_space<vmem>>, %arg17: memref<1x64xf32, #tpu.memory_space<vmem>>, %arg18: memref<64x32xf32, #tpu.memory_space<vmem>>, %arg19: memref<1x32xf32, #tpu.memory_space<vmem>>, %arg20: memref<1x32xf32, #tpu.memory_space<vmem>>, %arg21: memref<1x32xf32, #tpu.memory_space<vmem>>, %arg22: memref<1x8x32xf32, #tpu.memory_space<vmem>>) attributes {dimension_semantics = [#tpu.dimension_semantics<parallel>, #tpu.dimension_semantics<parallel>], iteration_bounds = array<i64: 2, 1>, scalar_prefetch = 0 : i64, scratch_operands = 0 : i64, tpu.core_type = #tpu.core_type<tc>, window_params = [{transform_indices = @transform_0, window_bounds = array<i64: 1, 8, 32>}, {transform_indices = @transform_1, window_bounds = array<i64: 1, 8, 32>}, {transform_indices = @transform_2, window_bounds = array<i64: 1, 8, 64>}, {pipeline_mode = #tpu.pipeline_mode<synchronous>, transform_indices = @transform_3, window_bounds = array<i64: 4, 32, 8>}, {pipeline_mode = #tpu.pipeline_mode<synchronous>, transform_indices = @transform_4, window_bounds = array<i64: 4, 1, 8>}, {pipeline_mode = #tpu.pipeline_mode<synchronous>, transform_indices = @transform_5, window_bounds = array<i64: 4, 32, 8>}, {pipeline_mode = #tpu.pipeline_mode<synchronous>, transform_indices = @transform_6, window_bounds = array<i64: 4, 1, 8>}, {pipeline_mode = #tpu.pipeline_mode<synchronous>, transform_indices = @transform_7, window_bounds = array<i64: 4, 64, 16>}, {pipeline_mode = #tpu.pipeline_mode<synchronous>, transform_indices = @transform_8, window_bounds = array<i64: 4, 1, 16>}, {pipeline_mode = #tpu.pipeline_mode<synchronous>, transform_indices = @transform_9, window_bounds = array<i64: 4, 16, 32>}, {pipeline_mode = #tpu.pipeline_mode<synchronous>, transform_indices = @transform_10, window_bounds = array<i64: 1, 32>}, {pipeline_mode = #tpu.pipeline_mode<synchronous>, transform_indices = @transform_11, window_bounds = array<i64: 4, 1, 1>}, {pipeline_mode = #tpu.pipeline_mode<synchronous>, transform_indices = @transform_12, window_bounds = array<i64: 1, 32>}, {pipeline_mode = #tpu.pipeline_mode<synchronous>, transform_indices = @transform_13, window_bounds = array<i64: 1, 32>}, {pipeline_mode = #tpu.pipeline_mode<synchronous>, transform_indices = @transform_14, window_bounds = array<i64: 32, 64>}, {pipeline_mode = #tpu.pipeline_mode<synchronous>, transform_indices = @transform_15, window_bounds = array<i64: 1, 64>}, {pipeline_mode = #tpu.pipeline_mode<synchronous>, transform_indices = @transform_16, window_bounds = array<i64: 64, 32>}, {pipeline_mode = #tpu.pipeline_mode<synchronous>, transform_indices = @transform_17, window_bounds = array<i64: 1, 32>}, {pipeline_mode = #tpu.pipeline_mode<synchronous>, transform_indices = @transform_18, window_bounds = array<i64: 1, 32>}, {pipeline_mode = #tpu.pipeline_mode<synchronous>, transform_indices = @transform_19, window_bounds = array<i64: 1, 32>}, {transform_indices = @transform_20, window_bounds = array<i64: 1, 8, 32>}]} {
    %c8_i32 = arith.constant 8 : i32
    %0 = arith.muli %arg1, %c8_i32 : i32
    %c0 = arith.constant 0 : index
    %c0_0 = arith.constant 0 : index
    %c0_1 = arith.constant 0 : index
    %1 = vector.load %arg2[%c0, %c0_0, %c0_1] : memref<1x8x32xf32, #tpu.memory_space<vmem>>, vector<1x8x32xf32>
    %2 = vector.shape_cast %1 : vector<1x8x32xf32> to vector<8x32xf32>
    %c0_2 = arith.constant 0 : index
    %c0_3 = arith.constant 0 : index
    %c0_4 = arith.constant 0 : index
    %3 = vector.load %arg3[%c0_2, %c0_3, %c0_4] : memref<1x8x32xf32, #tpu.memory_space<vmem>>, vector<1x8x32xf32>
    %4 = vector.shape_cast %3 : vector<1x8x32xf32> to vector<8x32xf32>
    %c0_5 = arith.constant 0 : index
    %c0_6 = arith.constant 0 : index
    %c0_7 = arith.constant 0 : index
    %5 = vector.load %arg4[%c0_5, %c0_6, %c0_7] : memref<1x8x64xf32, #tpu.memory_space<vmem>>, vector<1x8x64xf32>
    %6 = vector.shape_cast %5 : vector<1x8x64xf32> to vector<8x64xf32>
    %7 = tpu.iota {dimensions = array<i32: 0>} : vector<8x8xi32>
    %8 = vector.broadcast %0 : i32 to vector<8x8xi32>
    %9 = arith.addi %8, %7 : vector<8x8xi32>
    %10 = tpu.iota {dimensions = array<i32: 1>} : vector<8x8xi32>
    %c0_i32 = arith.constant 0 : i32
    %11 = vector.broadcast %c0_i32 : i32 to vector<8x8xi32>
    %12 = arith.addi %9, %11 : vector<8x8xi32>
    %13 = arith.cmpi slt, %10, %12 : vector<8x8xi32>
    %14 = arith.extui %13 : vector<8x8xi1> to vector<8x8xi32>
    %15 = arith.sitofp %14 : vector<8x8xi32> to vector<8x8xf32>
    %16 = arith.sitofp %9 : vector<8x8xi32> to vector<8x8xf32>
    %17 = arith.sitofp %10 : vector<8x8xi32> to vector<8x8xf32>
    %18 = arith.subf %16, %17 : vector<8x8xf32>
    %19 = math.absf %18 : vector<8x8xf32>
    %20 = tpu.iota {dimensions = array<i32: 0>} : vector<8x8xi32>
    %21 = tpu.iota {dimensions = array<i32: 1>} : vector<8x8xi32>
    %22 = arith.cmpi sgt, %20, %21 : vector<8x8xi32>
    %23 = arith.extui %22 : vector<8x8xi1> to vector<8x8xi32>
    %24 = arith.sitofp %23 : vector<8x8xi32> to vector<8x8xf32>
    %25 = vector.extract_strided_slice %9 {offsets = [0, 0], sizes = [8, 1], strides = [1, 1]} : vector<8x8xi32> to vector<8x1xi32>
    %c0_i32_8 = arith.constant 0 : i32
    %26 = vector.broadcast %c0_i32_8 : i32 to vector<8x1xi32>
    %27 = arith.cmpi ne, %25, %26 : vector<8x1xi32>
    %28 = arith.extui %27 : vector<8x1xi1> to vector<8x1xi32>
    %29 = arith.sitofp %28 : vector<8x1xi32> to vector<8x1xf32>
    %cst = arith.constant 0.000000e+00 : f32
    %30 = vector.broadcast %cst : f32 to vector<8x32xf32>
    %cst_9 = arith.constant -1.000000e+32 : f32
    %c0_i32_10 = arith.constant 0 : i32
    %31 = arith.index_cast %c0_i32_10 : i32 to index
    %c0_11 = arith.constant 0 : index
    %c0_12 = arith.constant 0 : index
    %32 = vector.load %arg5[%31, %c0_11, %c0_12] : memref<4x32x8xf32, #tpu.memory_space<vmem>>, vector<1x32x8xf32>
    %33 = vector.shape_cast %32 : vector<1x32x8xf32> to vector<32x8xf32>
    %cst_13 = arith.constant dense<0.000000e+00> : vector<8x8xf32>
    %34 = tpu.matmul %2, %33, %cst_13 {dimension_numbers = #tpu.dot_dimension_numbers<[1], [0], [0], [1], [0, 0, 1, 1], [], []>} : vector<8x32xf32>, vector<32x8xf32>, vector<8x8xf32> -> vector<8x8xf32>
    %35 = arith.index_cast %c0_i32_10 : i32 to index
    %c0_14 = arith.constant 0 : index
    %c0_15 = arith.constant 0 : index
    %36 = vector.load %arg6[%35, %c0_14, %c0_15] : memref<4x1x8xf32, #tpu.memory_space<vmem>>, vector<1x1x8xf32>
    %37 = vector.shape_cast %36 : vector<1x1x8xf32> to vector<1x8xf32>
    %38 = vector.broadcast %37 : vector<1x8xf32> to vector<8x8xf32>
    %39 = arith.addf %34, %38 : vector<8x8xf32>
    %40 = arith.index_cast %c0_i32_10 : i32 to index
    %c0_16 = arith.constant 0 : index
    %c0_17 = arith.constant 0 : index
    %41 = vector.load %arg7[%40, %c0_16, %c0_17] : memref<4x32x8xf32, #tpu.memory_space<vmem>>, vector<1x32x8xf32>
    %42 = vector.shape_cast %41 : vector<1x32x8xf32> to vector<32x8xf32>
    %cst_18 = arith.constant dense<0.000000e+00> : vector<8x8xf32>
    %43 = tpu.matmul %4, %42, %cst_18 {dimension_numbers = #tpu.dot_dimension_numbers<[1], [0], [0], [1], [0, 0, 1, 1], [], []>} : vector<8x32xf32>, vector<32x8xf32>, vector<8x8xf32> -> vector<8x8xf32>
    %44 = arith.index_cast %c0_i32_10 : i32 to index
    %c0_19 = arith.constant 0 : index
    %c0_20 = arith.constant 0 : index
    %45 = vector.load %arg8[%44, %c0_19, %c0_20] : memref<4x1x8xf32, #tpu.memory_space<vmem>>, vector<1x1x8xf32>
    %46 = vector.shape_cast %45 : vector<1x1x8xf32> to vector<1x8xf32>
    %47 = vector.broadcast %46 : vector<1x8xf32> to vector<8x8xf32>
    %48 = arith.addf %43, %47 : vector<8x8xf32>
    %49 = arith.index_cast %c0_i32_10 : i32 to index
    %c0_21 = arith.constant 0 : index
    %c0_22 = arith.constant 0 : index
    %50 = vector.load %arg9[%49, %c0_21, %c0_22] : memref<4x64x16xf32, #tpu.memory_space<vmem>>, vector<1x64x16xf32>
    %51 = vector.shape_cast %50 : vector<1x64x16xf32> to vector<64x16xf32>
    %cst_23 = arith.constant dense<0.000000e+00> : vector<8x16xf32>
    %52 = tpu.matmul %6, %51, %cst_23 {dimension_numbers = #tpu.dot_dimension_numbers<[1], [0], [0], [1], [0, 0, 1, 1], [], []>} : vector<8x64xf32>, vector<64x16xf32>, vector<8x16xf32> -> vector<8x16xf32>
    %53 = arith.index_cast %c0_i32_10 : i32 to index
    %c0_24 = arith.constant 0 : index
    %c0_25 = arith.constant 0 : index
    %54 = vector.load %arg10[%53, %c0_24, %c0_25] : memref<4x1x16xf32, #tpu.memory_space<vmem>>, vector<1x1x16xf32>
    %55 = vector.shape_cast %54 : vector<1x1x16xf32> to vector<1x16xf32>
    %56 = vector.broadcast %55 : vector<1x16xf32> to vector<8x16xf32>
    %57 = arith.addf %52, %56 : vector<8x16xf32>
    %cst_26 = arith.constant dense<0.000000e+00> : vector<8x8xf32>
    %58 = tpu.matmul %39, %48, %cst_26 {dimension_numbers = #tpu.dot_dimension_numbers<[1], [1], [0], [0], [0, 0, 1, 0], [], []>} : vector<8x8xf32>, vector<8x8xf32>, vector<8x8xf32> -> vector<8x8xf32>
    %59 = vector.broadcast %cst_9 : f32 to vector<8x8xf32>
    %60 = arith.select %13, %58, %59 : vector<8x8xi1>, vector<8x8xf32>
    %cst_27 = arith.constant dense<0xFF800000> : vector<8xf32>
    %61 = vector.multi_reduction <maximumf>, %60, %cst_27 [1] : vector<8x8xf32> to vector<8xf32>
    %62 = vector.shape_cast %61 : vector<8xf32> to vector<8x1xf32>
    %63 = vector.broadcast %62 : vector<8x1xf32> to vector<8x8xf32>
    %64 = arith.subf %60, %63 : vector<8x8xf32>
    %65 = math.exp %64 : vector<8x8xf32>
    %cst_28 = arith.constant dense<0.000000e+00> : vector<8xf32>
    %66 = vector.multi_reduction <add>, %65, %cst_28 [1] : vector<8x8xf32> to vector<8xf32>
    %67 = vector.shape_cast %66 : vector<8xf32> to vector<8x1xf32>
    %68 = tpu.reciprocal %67 : vector<8x1xf32> -> vector<8x1xf32>
    %69 = vector.broadcast %68 : vector<8x1xf32> to vector<8x8xf32>
    %70 = arith.mulf %65, %69 : vector<8x8xf32>
    %71 = arith.mulf %70, %15 : vector<8x8xf32>
    %cst_29 = arith.constant dense<0.000000e+00> : vector<8x8xf32>
    %72 = tpu.matmul %71, %24, %cst_29 {dimension_numbers = #tpu.dot_dimension_numbers<[1], [0], [0], [1], [0, 0, 1, 1], [], []>} : vector<8x8xf32>, vector<8x8xf32>, vector<8x8xf32> -> vector<8x8xf32>
    %73 = arith.mulf %72, %19 : vector<8x8xf32>
    %cst_30 = arith.constant 0.000000e+00 : f32
    %74 = vector.broadcast %cst_30 : f32 to vector<8x8xf32>
    %75 = arith.maximumf %73, %74 : vector<8x8xf32>
    %76 = math.sqrt %75 : vector<8x8xf32>
    %77 = arith.index_cast %c0_i32_10 : i32 to index
    %c0_31 = arith.constant 0 : index
    %c0_32 = arith.constant 0 : index
    %78 = vector.load %arg13[%77, %c0_31, %c0_32] : memref<4x1x1xf32, #tpu.memory_space<vmem>>, vector<1x1x1xf32>
    %79 = vector.shape_cast %78 : vector<1x1x1xf32> to vector<1x1xf32>
    %cst_33 = arith.constant 0.000000e+00 : f32
    %80 = vector.broadcast %cst_33 : f32 to vector<1x1xf32>
    %81 = arith.maximumf %79, %80 : vector<1x1xf32>
    %82 = math.absf %79 : vector<1x1xf32>
    %cst_34 = arith.constant 0.000000e+00 : f32
    %83 = vector.broadcast %cst_34 : f32 to vector<1x1xf32>
    %84 = arith.subf %83, %82 : vector<1x1xf32>
    %85 = math.exp %84 : vector<1x1xf32>
    %cst_35 = arith.constant 1.000000e+00 : f32
    %86 = vector.broadcast %cst_35 : f32 to vector<1x1xf32>
    %87 = arith.addf %86, %85 : vector<1x1xf32>
    %88 = math.log %87 : vector<1x1xf32>
    %89 = arith.addf %81, %88 : vector<1x1xf32>
    %cst_36 = arith.constant 0.000000e+00 : f32
    %90 = vector.broadcast %cst_36 : f32 to vector<1x1xf32>
    %91 = arith.subf %90, %89 : vector<1x1xf32>
    %92 = vector.broadcast %91 : vector<1x1xf32> to vector<8x8xf32>
    %93 = arith.mulf %76, %92 : vector<8x8xf32>
    %94 = math.exp %93 : vector<8x8xf32>
    %cst_37 = arith.constant 9.99999974E-6 : f32
    %cst_38 = arith.constant 1.000000e+05 : f32
    %95 = vector.broadcast %cst_37 : f32 to vector<8x8xf32>
    %96 = arith.maximumf %95, %94 : vector<8x8xf32>
    %97 = vector.broadcast %cst_38 : f32 to vector<8x8xf32>
    %98 = arith.minimumf %97, %96 : vector<8x8xf32>
    %99 = arith.mulf %58, %98 : vector<8x8xf32>
    %100 = vector.broadcast %cst_9 : f32 to vector<8x8xf32>
    %101 = arith.select %13, %99, %100 : vector<8x8xi1>, vector<8x8xf32>
    %cst_39 = arith.constant dense<0xFF800000> : vector<8xf32>
    %102 = vector.multi_reduction <maximumf>, %101, %cst_39 [1] : vector<8x8xf32> to vector<8xf32>
    %103 = vector.shape_cast %102 : vector<8xf32> to vector<8x1xf32>
    %104 = vector.broadcast %103 : vector<8x1xf32> to vector<8x8xf32>
    %105 = arith.subf %101, %104 : vector<8x8xf32>
    %106 = math.exp %105 : vector<8x8xf32>
    %cst_40 = arith.constant dense<0.000000e+00> : vector<8xf32>
    %107 = vector.multi_reduction <add>, %106, %cst_40 [1] : vector<8x8xf32> to vector<8xf32>
    %108 = vector.shape_cast %107 : vector<8xf32> to vector<8x1xf32>
    %109 = tpu.reciprocal %108 : vector<8x1xf32> -> vector<8x1xf32>
    %110 = vector.broadcast %109 : vector<8x1xf32> to vector<8x8xf32>
    %111 = arith.mulf %106, %110 : vector<8x8xf32>
    %112 = vector.broadcast %29 : vector<8x1xf32> to vector<8x8xf32>
    %113 = arith.mulf %111, %112 : vector<8x8xf32>
    %cst_41 = arith.constant dense<0.000000e+00> : vector<8x16xf32>
    %114 = tpu.matmul %113, %57, %cst_41 {dimension_numbers = #tpu.dot_dimension_numbers<[1], [0], [0], [1], [0, 0, 1, 1], [], []>} : vector<8x8xf32>, vector<8x16xf32>, vector<8x16xf32> -> vector<8x16xf32>
    %115 = arith.index_cast %c0_i32_10 : i32 to index
    %c0_42 = arith.constant 0 : index
    %c0_43 = arith.constant 0 : index
    %116 = vector.load %arg11[%115, %c0_42, %c0_43] : memref<4x16x32xf32, #tpu.memory_space<vmem>>, vector<1x16x32xf32>
    %117 = vector.shape_cast %116 : vector<1x16x32xf32> to vector<16x32xf32>
    %cst_44 = arith.constant dense<0.000000e+00> : vector<8x32xf32>
    %118 = tpu.matmul %114, %117, %cst_44 {dimension_numbers = #tpu.dot_dimension_numbers<[1], [0], [0], [1], [0, 0, 1, 1], [], []>} : vector<8x16xf32>, vector<16x32xf32>, vector<8x32xf32> -> vector<8x32xf32>
    %119 = arith.addf %30, %118 : vector<8x32xf32>
    %c1_i32 = arith.constant 1 : i32
    %120 = arith.index_cast %c1_i32 : i32 to index
    %c0_45 = arith.constant 0 : index
    %c0_46 = arith.constant 0 : index
    %121 = vector.load %arg5[%120, %c0_45, %c0_46] : memref<4x32x8xf32, #tpu.memory_space<vmem>>, vector<1x32x8xf32>
    %122 = vector.shape_cast %121 : vector<1x32x8xf32> to vector<32x8xf32>
    %cst_47 = arith.constant dense<0.000000e+00> : vector<8x8xf32>
    %123 = tpu.matmul %2, %122, %cst_47 {dimension_numbers = #tpu.dot_dimension_numbers<[1], [0], [0], [1], [0, 0, 1, 1], [], []>} : vector<8x32xf32>, vector<32x8xf32>, vector<8x8xf32> -> vector<8x8xf32>
    %124 = arith.index_cast %c1_i32 : i32 to index
    %c0_48 = arith.constant 0 : index
    %c0_49 = arith.constant 0 : index
    %125 = vector.load %arg6[%124, %c0_48, %c0_49] : memref<4x1x8xf32, #tpu.memory_space<vmem>>, vector<1x1x8xf32>
    %126 = vector.shape_cast %125 : vector<1x1x8xf32> to vector<1x8xf32>
    %127 = vector.broadcast %126 : vector<1x8xf32> to vector<8x8xf32>
    %128 = arith.addf %123, %127 : vector<8x8xf32>
    %129 = arith.index_cast %c1_i32 : i32 to index
    %c0_50 = arith.constant 0 : index
    %c0_51 = arith.constant 0 : index
    %130 = vector.load %arg7[%129, %c0_50, %c0_51] : memref<4x32x8xf32, #tpu.memory_space<vmem>>, vector<1x32x8xf32>
    %131 = vector.shape_cast %130 : vector<1x32x8xf32> to vector<32x8xf32>
    %cst_52 = arith.constant dense<0.000000e+00> : vector<8x8xf32>
    %132 = tpu.matmul %4, %131, %cst_52 {dimension_numbers = #tpu.dot_dimension_numbers<[1], [0], [0], [1], [0, 0, 1, 1], [], []>} : vector<8x32xf32>, vector<32x8xf32>, vector<8x8xf32> -> vector<8x8xf32>
    %133 = arith.index_cast %c1_i32 : i32 to index
    %c0_53 = arith.constant 0 : index
    %c0_54 = arith.constant 0 : index
    %134 = vector.load %arg8[%133, %c0_53, %c0_54] : memref<4x1x8xf32, #tpu.memory_space<vmem>>, vector<1x1x8xf32>
    %135 = vector.shape_cast %134 : vector<1x1x8xf32> to vector<1x8xf32>
    %136 = vector.broadcast %135 : vector<1x8xf32> to vector<8x8xf32>
    %137 = arith.addf %132, %136 : vector<8x8xf32>
    %138 = arith.index_cast %c1_i32 : i32 to index
    %c0_55 = arith.constant 0 : index
    %c0_56 = arith.constant 0 : index
    %139 = vector.load %arg9[%138, %c0_55, %c0_56] : memref<4x64x16xf32, #tpu.memory_space<vmem>>, vector<1x64x16xf32>
    %140 = vector.shape_cast %139 : vector<1x64x16xf32> to vector<64x16xf32>
    %cst_57 = arith.constant dense<0.000000e+00> : vector<8x16xf32>
    %141 = tpu.matmul %6, %140, %cst_57 {dimension_numbers = #tpu.dot_dimension_numbers<[1], [0], [0], [1], [0, 0, 1, 1], [], []>} : vector<8x64xf32>, vector<64x16xf32>, vector<8x16xf32> -> vector<8x16xf32>
    %142 = arith.index_cast %c1_i32 : i32 to index
    %c0_58 = arith.constant 0 : index
    %c0_59 = arith.constant 0 : index
    %143 = vector.load %arg10[%142, %c0_58, %c0_59] : memref<4x1x16xf32, #tpu.memory_space<vmem>>, vector<1x1x16xf32>
    %144 = vector.shape_cast %143 : vector<1x1x16xf32> to vector<1x16xf32>
    %145 = vector.broadcast %144 : vector<1x16xf32> to vector<8x16xf32>
    %146 = arith.addf %141, %145 : vector<8x16xf32>
    %cst_60 = arith.constant dense<0.000000e+00> : vector<8x8xf32>
    %147 = tpu.matmul %128, %137, %cst_60 {dimension_numbers = #tpu.dot_dimension_numbers<[1], [1], [0], [0], [0, 0, 1, 0], [], []>} : vector<8x8xf32>, vector<8x8xf32>, vector<8x8xf32> -> vector<8x8xf32>
    %148 = vector.broadcast %cst_9 : f32 to vector<8x8xf32>
    %149 = arith.select %13, %147, %148 : vector<8x8xi1>, vector<8x8xf32>
    %cst_61 = arith.constant dense<0xFF800000> : vector<8xf32>
    %150 = vector.multi_reduction <maximumf>, %149, %cst_61 [1] : vector<8x8xf32> to vector<8xf32>
    %151 = vector.shape_cast %150 : vector<8xf32> to vector<8x1xf32>
    %152 = vector.broadcast %151 : vector<8x1xf32> to vector<8x8xf32>
    %153 = arith.subf %149, %152 : vector<8x8xf32>
    %154 = math.exp %153 : vector<8x8xf32>
    %cst_62 = arith.constant dense<0.000000e+00> : vector<8xf32>
    %155 = vector.multi_reduction <add>, %154, %cst_62 [1] : vector<8x8xf32> to vector<8xf32>
    %156 = vector.shape_cast %155 : vector<8xf32> to vector<8x1xf32>
    %157 = tpu.reciprocal %156 : vector<8x1xf32> -> vector<8x1xf32>
    %158 = vector.broadcast %157 : vector<8x1xf32> to vector<8x8xf32>
    %159 = arith.mulf %154, %158 : vector<8x8xf32>
    %160 = arith.mulf %159, %15 : vector<8x8xf32>
    %cst_63 = arith.constant dense<0.000000e+00> : vector<8x8xf32>
    %161 = tpu.matmul %160, %24, %cst_63 {dimension_numbers = #tpu.dot_dimension_numbers<[1], [0], [0], [1], [0, 0, 1, 1], [], []>} : vector<8x8xf32>, vector<8x8xf32>, vector<8x8xf32> -> vector<8x8xf32>
    %162 = arith.mulf %161, %19 : vector<8x8xf32>
    %cst_64 = arith.constant 0.000000e+00 : f32
    %163 = vector.broadcast %cst_64 : f32 to vector<8x8xf32>
    %164 = arith.maximumf %162, %163 : vector<8x8xf32>
    %165 = math.sqrt %164 : vector<8x8xf32>
    %166 = arith.index_cast %c1_i32 : i32 to index
    %c0_65 = arith.constant 0 : index
    %c0_66 = arith.constant 0 : index
    %167 = vector.load %arg13[%166, %c0_65, %c0_66] : memref<4x1x1xf32, #tpu.memory_space<vmem>>, vector<1x1x1xf32>
    %168 = vector.shape_cast %167 : vector<1x1x1xf32> to vector<1x1xf32>
    %cst_67 = arith.constant 0.000000e+00 : f32
    %169 = vector.broadcast %cst_67 : f32 to vector<1x1xf32>
    %170 = arith.maximumf %168, %169 : vector<1x1xf32>
    %171 = math.absf %168 : vector<1x1xf32>
    %cst_68 = arith.constant 0.000000e+00 : f32
    %172 = vector.broadcast %cst_68 : f32 to vector<1x1xf32>
    %173 = arith.subf %172, %171 : vector<1x1xf32>
    %174 = math.exp %173 : vector<1x1xf32>
    %cst_69 = arith.constant 1.000000e+00 : f32
    %175 = vector.broadcast %cst_69 : f32 to vector<1x1xf32>
    %176 = arith.addf %175, %174 : vector<1x1xf32>
    %177 = math.log %176 : vector<1x1xf32>
    %178 = arith.addf %170, %177 : vector<1x1xf32>
    %cst_70 = arith.constant 0.000000e+00 : f32
    %179 = vector.broadcast %cst_70 : f32 to vector<1x1xf32>
    %180 = arith.subf %179, %178 : vector<1x1xf32>
    %181 = vector.broadcast %180 : vector<1x1xf32> to vector<8x8xf32>
    %182 = arith.mulf %165, %181 : vector<8x8xf32>
    %183 = math.exp %182 : vector<8x8xf32>
    %cst_71 = arith.constant 9.99999974E-6 : f32
    %cst_72 = arith.constant 1.000000e+05 : f32
    %184 = vector.broadcast %cst_71 : f32 to vector<8x8xf32>
    %185 = arith.maximumf %184, %183 : vector<8x8xf32>
    %186 = vector.broadcast %cst_72 : f32 to vector<8x8xf32>
    %187 = arith.minimumf %186, %185 : vector<8x8xf32>
    %188 = arith.mulf %147, %187 : vector<8x8xf32>
    %189 = vector.broadcast %cst_9 : f32 to vector<8x8xf32>
    %190 = arith.select %13, %188, %189 : vector<8x8xi1>, vector<8x8xf32>
    %cst_73 = arith.constant dense<0xFF800000> : vector<8xf32>
    %191 = vector.multi_reduction <maximumf>, %190, %cst_73 [1] : vector<8x8xf32> to vector<8xf32>
    %192 = vector.shape_cast %191 : vector<8xf32> to vector<8x1xf32>
    %193 = vector.broadcast %192 : vector<8x1xf32> to vector<8x8xf32>
    %194 = arith.subf %190, %193 : vector<8x8xf32>
    %195 = math.exp %194 : vector<8x8xf32>
    %cst_74 = arith.constant dense<0.000000e+00> : vector<8xf32>
    %196 = vector.multi_reduction <add>, %195, %cst_74 [1] : vector<8x8xf32> to vector<8xf32>
    %197 = vector.shape_cast %196 : vector<8xf32> to vector<8x1xf32>
    %198 = tpu.reciprocal %197 : vector<8x1xf32> -> vector<8x1xf32>
    %199 = vector.broadcast %198 : vector<8x1xf32> to vector<8x8xf32>
    %200 = arith.mulf %195, %199 : vector<8x8xf32>
    %201 = vector.broadcast %29 : vector<8x1xf32> to vector<8x8xf32>
    %202 = arith.mulf %200, %201 : vector<8x8xf32>
    %cst_75 = arith.constant dense<0.000000e+00> : vector<8x16xf32>
    %203 = tpu.matmul %202, %146, %cst_75 {dimension_numbers = #tpu.dot_dimension_numbers<[1], [0], [0], [1], [0, 0, 1, 1], [], []>} : vector<8x8xf32>, vector<8x16xf32>, vector<8x16xf32> -> vector<8x16xf32>
    %204 = arith.index_cast %c1_i32 : i32 to index
    %c0_76 = arith.constant 0 : index
    %c0_77 = arith.constant 0 : index
    %205 = vector.load %arg11[%204, %c0_76, %c0_77] : memref<4x16x32xf32, #tpu.memory_space<vmem>>, vector<1x16x32xf32>
    %206 = vector.shape_cast %205 : vector<1x16x32xf32> to vector<16x32xf32>
    %cst_78 = arith.constant dense<0.000000e+00> : vector<8x32xf32>
    %207 = tpu.matmul %203, %206, %cst_78 {dimension_numbers = #tpu.dot_dimension_numbers<[1], [0], [0], [1], [0, 0, 1, 1], [], []>} : vector<8x16xf32>, vector<16x32xf32>, vector<8x32xf32> -> vector<8x32xf32>
    %208 = arith.addf %119, %207 : vector<8x32xf32>
    %c2_i32 = arith.constant 2 : i32
    %209 = arith.index_cast %c2_i32 : i32 to index
    %c0_79 = arith.constant 0 : index
    %c0_80 = arith.constant 0 : index
    %210 = vector.load %arg5[%209, %c0_79, %c0_80] : memref<4x32x8xf32, #tpu.memory_space<vmem>>, vector<1x32x8xf32>
    %211 = vector.shape_cast %210 : vector<1x32x8xf32> to vector<32x8xf32>
    %cst_81 = arith.constant dense<0.000000e+00> : vector<8x8xf32>
    %212 = tpu.matmul %2, %211, %cst_81 {dimension_numbers = #tpu.dot_dimension_numbers<[1], [0], [0], [1], [0, 0, 1, 1], [], []>} : vector<8x32xf32>, vector<32x8xf32>, vector<8x8xf32> -> vector<8x8xf32>
    %213 = arith.index_cast %c2_i32 : i32 to index
    %c0_82 = arith.constant 0 : index
    %c0_83 = arith.constant 0 : index
    %214 = vector.load %arg6[%213, %c0_82, %c0_83] : memref<4x1x8xf32, #tpu.memory_space<vmem>>, vector<1x1x8xf32>
    %215 = vector.shape_cast %214 : vector<1x1x8xf32> to vector<1x8xf32>
    %216 = vector.broadcast %215 : vector<1x8xf32> to vector<8x8xf32>
    %217 = arith.addf %212, %216 : vector<8x8xf32>
    %218 = arith.index_cast %c2_i32 : i32 to index
    %c0_84 = arith.constant 0 : index
    %c0_85 = arith.constant 0 : index
    %219 = vector.load %arg7[%218, %c0_84, %c0_85] : memref<4x32x8xf32, #tpu.memory_space<vmem>>, vector<1x32x8xf32>
    %220 = vector.shape_cast %219 : vector<1x32x8xf32> to vector<32x8xf32>
    %cst_86 = arith.constant dense<0.000000e+00> : vector<8x8xf32>
    %221 = tpu.matmul %4, %220, %cst_86 {dimension_numbers = #tpu.dot_dimension_numbers<[1], [0], [0], [1], [0, 0, 1, 1], [], []>} : vector<8x32xf32>, vector<32x8xf32>, vector<8x8xf32> -> vector<8x8xf32>
    %222 = arith.index_cast %c2_i32 : i32 to index
    %c0_87 = arith.constant 0 : index
    %c0_88 = arith.constant 0 : index
    %223 = vector.load %arg8[%222, %c0_87, %c0_88] : memref<4x1x8xf32, #tpu.memory_space<vmem>>, vector<1x1x8xf32>
    %224 = vector.shape_cast %223 : vector<1x1x8xf32> to vector<1x8xf32>
    %225 = vector.broadcast %224 : vector<1x8xf32> to vector<8x8xf32>
    %226 = arith.addf %221, %225 : vector<8x8xf32>
    %227 = arith.index_cast %c2_i32 : i32 to index
    %c0_89 = arith.constant 0 : index
    %c0_90 = arith.constant 0 : index
    %228 = vector.load %arg9[%227, %c0_89, %c0_90] : memref<4x64x16xf32, #tpu.memory_space<vmem>>, vector<1x64x16xf32>
    %229 = vector.shape_cast %228 : vector<1x64x16xf32> to vector<64x16xf32>
    %cst_91 = arith.constant dense<0.000000e+00> : vector<8x16xf32>
    %230 = tpu.matmul %6, %229, %cst_91 {dimension_numbers = #tpu.dot_dimension_numbers<[1], [0], [0], [1], [0, 0, 1, 1], [], []>} : vector<8x64xf32>, vector<64x16xf32>, vector<8x16xf32> -> vector<8x16xf32>
    %231 = arith.index_cast %c2_i32 : i32 to index
    %c0_92 = arith.constant 0 : index
    %c0_93 = arith.constant 0 : index
    %232 = vector.load %arg10[%231, %c0_92, %c0_93] : memref<4x1x16xf32, #tpu.memory_space<vmem>>, vector<1x1x16xf32>
    %233 = vector.shape_cast %232 : vector<1x1x16xf32> to vector<1x16xf32>
    %234 = vector.broadcast %233 : vector<1x16xf32> to vector<8x16xf32>
    %235 = arith.addf %230, %234 : vector<8x16xf32>
    %cst_94 = arith.constant dense<0.000000e+00> : vector<8x8xf32>
    %236 = tpu.matmul %217, %226, %cst_94 {dimension_numbers = #tpu.dot_dimension_numbers<[1], [1], [0], [0], [0, 0, 1, 0], [], []>} : vector<8x8xf32>, vector<8x8xf32>, vector<8x8xf32> -> vector<8x8xf32>
    %237 = vector.broadcast %cst_9 : f32 to vector<8x8xf32>
    %238 = arith.select %13, %236, %237 : vector<8x8xi1>, vector<8x8xf32>
    %cst_95 = arith.constant dense<0xFF800000> : vector<8xf32>
    %239 = vector.multi_reduction <maximumf>, %238, %cst_95 [1] : vector<8x8xf32> to vector<8xf32>
    %240 = vector.shape_cast %239 : vector<8xf32> to vector<8x1xf32>
    %241 = vector.broadcast %240 : vector<8x1xf32> to vector<8x8xf32>
    %242 = arith.subf %238, %241 : vector<8x8xf32>
    %243 = math.exp %242 : vector<8x8xf32>
    %cst_96 = arith.constant dense<0.000000e+00> : vector<8xf32>
    %244 = vector.multi_reduction <add>, %243, %cst_96 [1] : vector<8x8xf32> to vector<8xf32>
    %245 = vector.shape_cast %244 : vector<8xf32> to vector<8x1xf32>
    %246 = tpu.reciprocal %245 : vector<8x1xf32> -> vector<8x1xf32>
    %247 = vector.broadcast %246 : vector<8x1xf32> to vector<8x8xf32>
    %248 = arith.mulf %243, %247 : vector<8x8xf32>
    %249 = arith.mulf %248, %15 : vector<8x8xf32>
    %cst_97 = arith.constant dense<0.000000e+00> : vector<8x8xf32>
    %250 = tpu.matmul %249, %24, %cst_97 {dimension_numbers = #tpu.dot_dimension_numbers<[1], [0], [0], [1], [0, 0, 1, 1], [], []>} : vector<8x8xf32>, vector<8x8xf32>, vector<8x8xf32> -> vector<8x8xf32>
    %251 = arith.mulf %250, %19 : vector<8x8xf32>
    %cst_98 = arith.constant 0.000000e+00 : f32
    %252 = vector.broadcast %cst_98 : f32 to vector<8x8xf32>
    %253 = arith.maximumf %251, %252 : vector<8x8xf32>
    %254 = math.sqrt %253 : vector<8x8xf32>
    %255 = arith.index_cast %c2_i32 : i32 to index
    %c0_99 = arith.constant 0 : index
    %c0_100 = arith.constant 0 : index
    %256 = vector.load %arg13[%255, %c0_99, %c0_100] : memref<4x1x1xf32, #tpu.memory_space<vmem>>, vector<1x1x1xf32>
    %257 = vector.shape_cast %256 : vector<1x1x1xf32> to vector<1x1xf32>
    %cst_101 = arith.constant 0.000000e+00 : f32
    %258 = vector.broadcast %cst_101 : f32 to vector<1x1xf32>
    %259 = arith.maximumf %257, %258 : vector<1x1xf32>
    %260 = math.absf %257 : vector<1x1xf32>
    %cst_102 = arith.constant 0.000000e+00 : f32
    %261 = vector.broadcast %cst_102 : f32 to vector<1x1xf32>
    %262 = arith.subf %261, %260 : vector<1x1xf32>
    %263 = math.exp %262 : vector<1x1xf32>
    %cst_103 = arith.constant 1.000000e+00 : f32
    %264 = vector.broadcast %cst_103 : f32 to vector<1x1xf32>
    %265 = arith.addf %264, %263 : vector<1x1xf32>
    %266 = math.log %265 : vector<1x1xf32>
    %267 = arith.addf %259, %266 : vector<1x1xf32>
    %cst_104 = arith.constant 0.000000e+00 : f32
    %268 = vector.broadcast %cst_104 : f32 to vector<1x1xf32>
    %269 = arith.subf %268, %267 : vector<1x1xf32>
    %270 = vector.broadcast %269 : vector<1x1xf32> to vector<8x8xf32>
    %271 = arith.mulf %254, %270 : vector<8x8xf32>
    %272 = math.exp %271 : vector<8x8xf32>
    %cst_105 = arith.constant 9.99999974E-6 : f32
    %cst_106 = arith.constant 1.000000e+05 : f32
    %273 = vector.broadcast %cst_105 : f32 to vector<8x8xf32>
    %274 = arith.maximumf %273, %272 : vector<8x8xf32>
    %275 = vector.broadcast %cst_106 : f32 to vector<8x8xf32>
    %276 = arith.minimumf %275, %274 : vector<8x8xf32>
    %277 = arith.mulf %236, %276 : vector<8x8xf32>
    %278 = vector.broadcast %cst_9 : f32 to vector<8x8xf32>
    %279 = arith.select %13, %277, %278 : vector<8x8xi1>, vector<8x8xf32>
    %cst_107 = arith.constant dense<0xFF800000> : vector<8xf32>
    %280 = vector.multi_reduction <maximumf>, %279, %cst_107 [1] : vector<8x8xf32> to vector<8xf32>
    %281 = vector.shape_cast %280 : vector<8xf32> to vector<8x1xf32>
    %282 = vector.broadcast %281 : vector<8x1xf32> to vector<8x8xf32>
    %283 = arith.subf %279, %282 : vector<8x8xf32>
    %284 = math.exp %283 : vector<8x8xf32>
    %cst_108 = arith.constant dense<0.000000e+00> : vector<8xf32>
    %285 = vector.multi_reduction <add>, %284, %cst_108 [1] : vector<8x8xf32> to vector<8xf32>
    %286 = vector.shape_cast %285 : vector<8xf32> to vector<8x1xf32>
    %287 = tpu.reciprocal %286 : vector<8x1xf32> -> vector<8x1xf32>
    %288 = vector.broadcast %287 : vector<8x1xf32> to vector<8x8xf32>
    %289 = arith.mulf %284, %288 : vector<8x8xf32>
    %290 = vector.broadcast %29 : vector<8x1xf32> to vector<8x8xf32>
    %291 = arith.mulf %289, %290 : vector<8x8xf32>
    %cst_109 = arith.constant dense<0.000000e+00> : vector<8x16xf32>
    %292 = tpu.matmul %291, %235, %cst_109 {dimension_numbers = #tpu.dot_dimension_numbers<[1], [0], [0], [1], [0, 0, 1, 1], [], []>} : vector<8x8xf32>, vector<8x16xf32>, vector<8x16xf32> -> vector<8x16xf32>
    %293 = arith.index_cast %c2_i32 : i32 to index
    %c0_110 = arith.constant 0 : index
    %c0_111 = arith.constant 0 : index
    %294 = vector.load %arg11[%293, %c0_110, %c0_111] : memref<4x16x32xf32, #tpu.memory_space<vmem>>, vector<1x16x32xf32>
    %295 = vector.shape_cast %294 : vector<1x16x32xf32> to vector<16x32xf32>
    %cst_112 = arith.constant dense<0.000000e+00> : vector<8x32xf32>
    %296 = tpu.matmul %292, %295, %cst_112 {dimension_numbers = #tpu.dot_dimension_numbers<[1], [0], [0], [1], [0, 0, 1, 1], [], []>} : vector<8x16xf32>, vector<16x32xf32>, vector<8x32xf32> -> vector<8x32xf32>
    %297 = arith.addf %208, %296 : vector<8x32xf32>
    %c3_i32 = arith.constant 3 : i32
    %298 = arith.index_cast %c3_i32 : i32 to index
    %c0_113 = arith.constant 0 : index
    %c0_114 = arith.constant 0 : index
    %299 = vector.load %arg5[%298, %c0_113, %c0_114] : memref<4x32x8xf32, #tpu.memory_space<vmem>>, vector<1x32x8xf32>
    %300 = vector.shape_cast %299 : vector<1x32x8xf32> to vector<32x8xf32>
    %cst_115 = arith.constant dense<0.000000e+00> : vector<8x8xf32>
    %301 = tpu.matmul %2, %300, %cst_115 {dimension_numbers = #tpu.dot_dimension_numbers<[1], [0], [0], [1], [0, 0, 1, 1], [], []>} : vector<8x32xf32>, vector<32x8xf32>, vector<8x8xf32> -> vector<8x8xf32>
    %302 = arith.index_cast %c3_i32 : i32 to index
    %c0_116 = arith.constant 0 : index
    %c0_117 = arith.constant 0 : index
    %303 = vector.load %arg6[%302, %c0_116, %c0_117] : memref<4x1x8xf32, #tpu.memory_space<vmem>>, vector<1x1x8xf32>
    %304 = vector.shape_cast %303 : vector<1x1x8xf32> to vector<1x8xf32>
    %305 = vector.broadcast %304 : vector<1x8xf32> to vector<8x8xf32>
    %306 = arith.addf %301, %305 : vector<8x8xf32>
    %307 = arith.index_cast %c3_i32 : i32 to index
    %c0_118 = arith.constant 0 : index
    %c0_119 = arith.constant 0 : index
    %308 = vector.load %arg7[%307, %c0_118, %c0_119] : memref<4x32x8xf32, #tpu.memory_space<vmem>>, vector<1x32x8xf32>
    %309 = vector.shape_cast %308 : vector<1x32x8xf32> to vector<32x8xf32>
    %cst_120 = arith.constant dense<0.000000e+00> : vector<8x8xf32>
    %310 = tpu.matmul %4, %309, %cst_120 {dimension_numbers = #tpu.dot_dimension_numbers<[1], [0], [0], [1], [0, 0, 1, 1], [], []>} : vector<8x32xf32>, vector<32x8xf32>, vector<8x8xf32> -> vector<8x8xf32>
    %311 = arith.index_cast %c3_i32 : i32 to index
    %c0_121 = arith.constant 0 : index
    %c0_122 = arith.constant 0 : index
    %312 = vector.load %arg8[%311, %c0_121, %c0_122] : memref<4x1x8xf32, #tpu.memory_space<vmem>>, vector<1x1x8xf32>
    %313 = vector.shape_cast %312 : vector<1x1x8xf32> to vector<1x8xf32>
    %314 = vector.broadcast %313 : vector<1x8xf32> to vector<8x8xf32>
    %315 = arith.addf %310, %314 : vector<8x8xf32>
    %316 = arith.index_cast %c3_i32 : i32 to index
    %c0_123 = arith.constant 0 : index
    %c0_124 = arith.constant 0 : index
    %317 = vector.load %arg9[%316, %c0_123, %c0_124] : memref<4x64x16xf32, #tpu.memory_space<vmem>>, vector<1x64x16xf32>
    %318 = vector.shape_cast %317 : vector<1x64x16xf32> to vector<64x16xf32>
    %cst_125 = arith.constant dense<0.000000e+00> : vector<8x16xf32>
    %319 = tpu.matmul %6, %318, %cst_125 {dimension_numbers = #tpu.dot_dimension_numbers<[1], [0], [0], [1], [0, 0, 1, 1], [], []>} : vector<8x64xf32>, vector<64x16xf32>, vector<8x16xf32> -> vector<8x16xf32>
    %320 = arith.index_cast %c3_i32 : i32 to index
    %c0_126 = arith.constant 0 : index
    %c0_127 = arith.constant 0 : index
    %321 = vector.load %arg10[%320, %c0_126, %c0_127] : memref<4x1x16xf32, #tpu.memory_space<vmem>>, vector<1x1x16xf32>
    %322 = vector.shape_cast %321 : vector<1x1x16xf32> to vector<1x16xf32>
    %323 = vector.broadcast %322 : vector<1x16xf32> to vector<8x16xf32>
    %324 = arith.addf %319, %323 : vector<8x16xf32>
    %cst_128 = arith.constant dense<0.000000e+00> : vector<8x8xf32>
    %325 = tpu.matmul %306, %315, %cst_128 {dimension_numbers = #tpu.dot_dimension_numbers<[1], [1], [0], [0], [0, 0, 1, 0], [], []>} : vector<8x8xf32>, vector<8x8xf32>, vector<8x8xf32> -> vector<8x8xf32>
    %326 = vector.broadcast %cst_9 : f32 to vector<8x8xf32>
    %327 = arith.select %13, %325, %326 : vector<8x8xi1>, vector<8x8xf32>
    %cst_129 = arith.constant dense<0xFF800000> : vector<8xf32>
    %328 = vector.multi_reduction <maximumf>, %327, %cst_129 [1] : vector<8x8xf32> to vector<8xf32>
    %329 = vector.shape_cast %328 : vector<8xf32> to vector<8x1xf32>
    %330 = vector.broadcast %329 : vector<8x1xf32> to vector<8x8xf32>
    %331 = arith.subf %327, %330 : vector<8x8xf32>
    %332 = math.exp %331 : vector<8x8xf32>
    %cst_130 = arith.constant dense<0.000000e+00> : vector<8xf32>
    %333 = vector.multi_reduction <add>, %332, %cst_130 [1] : vector<8x8xf32> to vector<8xf32>
    %334 = vector.shape_cast %333 : vector<8xf32> to vector<8x1xf32>
    %335 = tpu.reciprocal %334 : vector<8x1xf32> -> vector<8x1xf32>
    %336 = vector.broadcast %335 : vector<8x1xf32> to vector<8x8xf32>
    %337 = arith.mulf %332, %336 : vector<8x8xf32>
    %338 = arith.mulf %337, %15 : vector<8x8xf32>
    %cst_131 = arith.constant dense<0.000000e+00> : vector<8x8xf32>
    %339 = tpu.matmul %338, %24, %cst_131 {dimension_numbers = #tpu.dot_dimension_numbers<[1], [0], [0], [1], [0, 0, 1, 1], [], []>} : vector<8x8xf32>, vector<8x8xf32>, vector<8x8xf32> -> vector<8x8xf32>
    %340 = arith.mulf %339, %19 : vector<8x8xf32>
    %cst_132 = arith.constant 0.000000e+00 : f32
    %341 = vector.broadcast %cst_132 : f32 to vector<8x8xf32>
    %342 = arith.maximumf %340, %341 : vector<8x8xf32>
    %343 = math.sqrt %342 : vector<8x8xf32>
    %344 = arith.index_cast %c3_i32 : i32 to index
    %c0_133 = arith.constant 0 : index
    %c0_134 = arith.constant 0 : index
    %345 = vector.load %arg13[%344, %c0_133, %c0_134] : memref<4x1x1xf32, #tpu.memory_space<vmem>>, vector<1x1x1xf32>
    %346 = vector.shape_cast %345 : vector<1x1x1xf32> to vector<1x1xf32>
    %cst_135 = arith.constant 0.000000e+00 : f32
    %347 = vector.broadcast %cst_135 : f32 to vector<1x1xf32>
    %348 = arith.maximumf %346, %347 : vector<1x1xf32>
    %349 = math.absf %346 : vector<1x1xf32>
    %cst_136 = arith.constant 0.000000e+00 : f32
    %350 = vector.broadcast %cst_136 : f32 to vector<1x1xf32>
    %351 = arith.subf %350, %349 : vector<1x1xf32>
    %352 = math.exp %351 : vector<1x1xf32>
    %cst_137 = arith.constant 1.000000e+00 : f32
    %353 = vector.broadcast %cst_137 : f32 to vector<1x1xf32>
    %354 = arith.addf %353, %352 : vector<1x1xf32>
    %355 = math.log %354 : vector<1x1xf32>
    %356 = arith.addf %348, %355 : vector<1x1xf32>
    %cst_138 = arith.constant 0.000000e+00 : f32
    %357 = vector.broadcast %cst_138 : f32 to vector<1x1xf32>
    %358 = arith.subf %357, %356 : vector<1x1xf32>
    %359 = vector.broadcast %358 : vector<1x1xf32> to vector<8x8xf32>
    %360 = arith.mulf %343, %359 : vector<8x8xf32>
    %361 = math.exp %360 : vector<8x8xf32>
    %cst_139 = arith.constant 9.99999974E-6 : f32
    %cst_140 = arith.constant 1.000000e+05 : f32
    %362 = vector.broadcast %cst_139 : f32 to vector<8x8xf32>
    %363 = arith.maximumf %362, %361 : vector<8x8xf32>
    %364 = vector.broadcast %cst_140 : f32 to vector<8x8xf32>
    %365 = arith.minimumf %364, %363 : vector<8x8xf32>
    %366 = arith.mulf %325, %365 : vector<8x8xf32>
    %367 = vector.broadcast %cst_9 : f32 to vector<8x8xf32>
    %368 = arith.select %13, %366, %367 : vector<8x8xi1>, vector<8x8xf32>
    %cst_141 = arith.constant dense<0xFF800000> : vector<8xf32>
    %369 = vector.multi_reduction <maximumf>, %368, %cst_141 [1] : vector<8x8xf32> to vector<8xf32>
    %370 = vector.shape_cast %369 : vector<8xf32> to vector<8x1xf32>
    %371 = vector.broadcast %370 : vector<8x1xf32> to vector<8x8xf32>
    %372 = arith.subf %368, %371 : vector<8x8xf32>
    %373 = math.exp %372 : vector<8x8xf32>
    %cst_142 = arith.constant dense<0.000000e+00> : vector<8xf32>
    %374 = vector.multi_reduction <add>, %373, %cst_142 [1] : vector<8x8xf32> to vector<8xf32>
    %375 = vector.shape_cast %374 : vector<8xf32> to vector<8x1xf32>
    %376 = tpu.reciprocal %375 : vector<8x1xf32> -> vector<8x1xf32>
    %377 = vector.broadcast %376 : vector<8x1xf32> to vector<8x8xf32>
    %378 = arith.mulf %373, %377 : vector<8x8xf32>
    %379 = vector.broadcast %29 : vector<8x1xf32> to vector<8x8xf32>
    %380 = arith.mulf %378, %379 : vector<8x8xf32>
    %cst_143 = arith.constant dense<0.000000e+00> : vector<8x16xf32>
    %381 = tpu.matmul %380, %324, %cst_143 {dimension_numbers = #tpu.dot_dimension_numbers<[1], [0], [0], [1], [0, 0, 1, 1], [], []>} : vector<8x8xf32>, vector<8x16xf32>, vector<8x16xf32> -> vector<8x16xf32>
    %382 = arith.index_cast %c3_i32 : i32 to index
    %c0_144 = arith.constant 0 : index
    %c0_145 = arith.constant 0 : index
    %383 = vector.load %arg11[%382, %c0_144, %c0_145] : memref<4x16x32xf32, #tpu.memory_space<vmem>>, vector<1x16x32xf32>
    %384 = vector.shape_cast %383 : vector<1x16x32xf32> to vector<16x32xf32>
    %cst_146 = arith.constant dense<0.000000e+00> : vector<8x32xf32>
    %385 = tpu.matmul %381, %384, %cst_146 {dimension_numbers = #tpu.dot_dimension_numbers<[1], [0], [0], [1], [0, 0, 1, 1], [], []>} : vector<8x16xf32>, vector<16x32xf32>, vector<8x32xf32> -> vector<8x32xf32>
    %386 = arith.addf %297, %385 : vector<8x32xf32>
    %c4_i32 = arith.constant 4 : i32
    %c0_147 = arith.constant 0 : index
    %c0_148 = arith.constant 0 : index
    %387 = vector.load %arg12[%c0_147, %c0_148] : memref<1x32xf32, #tpu.memory_space<vmem>>, vector<1x32xf32>
    %388 = vector.broadcast %387 : vector<1x32xf32> to vector<8x32xf32>
    %389 = arith.addf %386, %388 : vector<8x32xf32>
    %390 = arith.addf %2, %389 : vector<8x32xf32>
    %c0_149 = arith.constant 0 : index
    %c0_150 = arith.constant 0 : index
    %391 = vector.load %arg14[%c0_149, %c0_150] : memref<1x32xf32, #tpu.memory_space<vmem>>, vector<1x32xf32>
    %c0_151 = arith.constant 0 : index
    %c0_152 = arith.constant 0 : index
    %392 = vector.load %arg15[%c0_151, %c0_152] : memref<1x32xf32, #tpu.memory_space<vmem>>, vector<1x32xf32>
    %cst_153 = arith.constant dense<0.000000e+00> : vector<8xf32>
    %393 = vector.multi_reduction <add>, %390, %cst_153 [1] : vector<8x32xf32> to vector<8xf32>
    %394 = vector.shape_cast %393 : vector<8xf32> to vector<8x1xf32>
    %cst_154 = arith.constant 3.200000e+01 : f32
    %395 = vector.broadcast %cst_154 : f32 to vector<8x1xf32>
    %396 = arith.divf %394, %395 : vector<8x1xf32>
    %397 = vector.broadcast %396 : vector<8x1xf32> to vector<8x32xf32>
    %398 = arith.subf %390, %397 : vector<8x32xf32>
    %399 = vector.broadcast %396 : vector<8x1xf32> to vector<8x32xf32>
    %400 = arith.subf %390, %399 : vector<8x32xf32>
    %401 = arith.mulf %398, %400 : vector<8x32xf32>
    %cst_155 = arith.constant dense<0.000000e+00> : vector<8xf32>
    %402 = vector.multi_reduction <add>, %401, %cst_155 [1] : vector<8x32xf32> to vector<8xf32>
    %403 = vector.shape_cast %402 : vector<8xf32> to vector<8x1xf32>
    %cst_156 = arith.constant 3.200000e+01 : f32
    %404 = vector.broadcast %cst_156 : f32 to vector<8x1xf32>
    %405 = arith.divf %403, %404 : vector<8x1xf32>
    %406 = vector.broadcast %396 : vector<8x1xf32> to vector<8x32xf32>
    %407 = arith.subf %390, %406 : vector<8x32xf32>
    %cst_157 = arith.constant 9.99999974E-6 : f32
    %408 = vector.broadcast %cst_157 : f32 to vector<8x1xf32>
    %409 = arith.addf %405, %408 : vector<8x1xf32>
    %410 = math.rsqrt %409 : vector<8x1xf32>
    %411 = vector.broadcast %410 : vector<8x1xf32> to vector<8x32xf32>
    %412 = arith.mulf %407, %411 : vector<8x32xf32>
    %413 = vector.broadcast %391 : vector<1x32xf32> to vector<8x32xf32>
    %414 = arith.mulf %412, %413 : vector<8x32xf32>
    %415 = vector.broadcast %392 : vector<1x32xf32> to vector<8x32xf32>
    %416 = arith.addf %414, %415 : vector<8x32xf32>
    %c0_158 = arith.constant 0 : index
    %c0_159 = arith.constant 0 : index
    %417 = vector.load %arg16[%c0_158, %c0_159] : memref<32x64xf32, #tpu.memory_space<vmem>>, vector<32x64xf32>
    %cst_160 = arith.constant dense<0.000000e+00> : vector<8x64xf32>
    %418 = tpu.matmul %416, %417, %cst_160 {dimension_numbers = #tpu.dot_dimension_numbers<[1], [0], [0], [1], [0, 0, 1, 1], [], []>} : vector<8x32xf32>, vector<32x64xf32>, vector<8x64xf32> -> vector<8x64xf32>
    %c0_161 = arith.constant 0 : index
    %c0_162 = arith.constant 0 : index
    %419 = vector.load %arg17[%c0_161, %c0_162] : memref<1x64xf32, #tpu.memory_space<vmem>>, vector<1x64xf32>
    %420 = vector.broadcast %419 : vector<1x64xf32> to vector<8x64xf32>
    %421 = arith.addf %418, %420 : vector<8x64xf32>
    %cst_163 = arith.constant 0.000000e+00 : f32
    %422 = vector.broadcast %cst_163 : f32 to vector<8x64xf32>
    %423 = arith.maximumf %421, %422 : vector<8x64xf32>
    %c0_164 = arith.constant 0 : index
    %c0_165 = arith.constant 0 : index
    %424 = vector.load %arg18[%c0_164, %c0_165] : memref<64x32xf32, #tpu.memory_space<vmem>>, vector<64x32xf32>
    %cst_166 = arith.constant dense<0.000000e+00> : vector<8x32xf32>
    %425 = tpu.matmul %423, %424, %cst_166 {dimension_numbers = #tpu.dot_dimension_numbers<[1], [0], [0], [1], [0, 0, 1, 1], [], []>} : vector<8x64xf32>, vector<64x32xf32>, vector<8x32xf32> -> vector<8x32xf32>
    %c0_167 = arith.constant 0 : index
    %c0_168 = arith.constant 0 : index
    %426 = vector.load %arg19[%c0_167, %c0_168] : memref<1x32xf32, #tpu.memory_space<vmem>>, vector<1x32xf32>
    %427 = vector.broadcast %426 : vector<1x32xf32> to vector<8x32xf32>
    %428 = arith.addf %425, %427 : vector<8x32xf32>
    %429 = arith.addf %416, %428 : vector<8x32xf32>
    %c0_169 = arith.constant 0 : index
    %c0_170 = arith.constant 0 : index
    %430 = vector.load %arg20[%c0_169, %c0_170] : memref<1x32xf32, #tpu.memory_space<vmem>>, vector<1x32xf32>
    %c0_171 = arith.constant 0 : index
    %c0_172 = arith.constant 0 : index
    %431 = vector.load %arg21[%c0_171, %c0_172] : memref<1x32xf32, #tpu.memory_space<vmem>>, vector<1x32xf32>
    %cst_173 = arith.constant dense<0.000000e+00> : vector<8xf32>
    %432 = vector.multi_reduction <add>, %429, %cst_173 [1] : vector<8x32xf32> to vector<8xf32>
    %433 = vector.shape_cast %432 : vector<8xf32> to vector<8x1xf32>
    %cst_174 = arith.constant 3.200000e+01 : f32
    %434 = vector.broadcast %cst_174 : f32 to vector<8x1xf32>
    %435 = arith.divf %433, %434 : vector<8x1xf32>
    %436 = vector.broadcast %435 : vector<8x1xf32> to vector<8x32xf32>
    %437 = arith.subf %429, %436 : vector<8x32xf32>
    %438 = vector.broadcast %435 : vector<8x1xf32> to vector<8x32xf32>
    %439 = arith.subf %429, %438 : vector<8x32xf32>
    %440 = arith.mulf %437, %439 : vector<8x32xf32>
    %cst_175 = arith.constant dense<0.000000e+00> : vector<8xf32>
    %441 = vector.multi_reduction <add>, %440, %cst_175 [1] : vector<8x32xf32> to vector<8xf32>
    %442 = vector.shape_cast %441 : vector<8xf32> to vector<8x1xf32>
    %cst_176 = arith.constant 3.200000e+01 : f32
    %443 = vector.broadcast %cst_176 : f32 to vector<8x1xf32>
    %444 = arith.divf %442, %443 : vector<8x1xf32>
    %445 = vector.broadcast %435 : vector<8x1xf32> to vector<8x32xf32>
    %446 = arith.subf %429, %445 : vector<8x32xf32>
    %cst_177 = arith.constant 9.99999974E-6 : f32
    %447 = vector.broadcast %cst_177 : f32 to vector<8x1xf32>
    %448 = arith.addf %444, %447 : vector<8x1xf32>
    %449 = math.rsqrt %448 : vector<8x1xf32>
    %450 = vector.broadcast %449 : vector<8x1xf32> to vector<8x32xf32>
    %451 = arith.mulf %446, %450 : vector<8x32xf32>
    %452 = vector.broadcast %430 : vector<1x32xf32> to vector<8x32xf32>
    %453 = arith.mulf %451, %452 : vector<8x32xf32>
    %454 = vector.broadcast %431 : vector<1x32xf32> to vector<8x32xf32>
    %455 = arith.addf %453, %454 : vector<8x32xf32>
    %c0_178 = arith.constant 0 : index
    %c0_179 = arith.constant 0 : index
    %c0_180 = arith.constant 0 : index
    %456 = vector.load %arg22[%c0_178, %c0_179, %c0_180] : memref<1x8x32xf32, #tpu.memory_space<vmem>>, vector<1x8x32xf32>
    %457 = vector.shape_cast %456 : vector<1x8x32xf32> to vector<8x32xf32>
    %458 = vector.shape_cast %455 : vector<8x32xf32> to vector<1x8x32xf32>
    tpu.vector_store %arg22[%c0_178, %c0_179, %c0_180], %458 {strides = array<i32>} : memref<1x8x32xf32, #tpu.memory_space<vmem>>, vector<1x8x32xf32>,
    return
  }
  func.func @transform_0(%arg0: i32, %arg1: i32) -> (i32, i32, i32) {
    %c0_i32 = arith.constant 0 : i32
    %c0_i32_0 = arith.constant 0 : i32
    return %arg0, %arg1, %c0_i32 : i32, i32, i32
  }
  func.func @transform_1(%arg0: i32, %arg1: i32) -> (i32, i32, i32) {
    %c0_i32 = arith.constant 0 : i32
    %c0_i32_0 = arith.constant 0 : i32
    %c0_i32_1 = arith.constant 0 : i32
    return %arg0, %c0_i32, %c0_i32_0 : i32, i32, i32
  }
  func.func @transform_2(%arg0: i32, %arg1: i32) -> (i32, i32, i32) {
    %c0_i32 = arith.constant 0 : i32
    %c0_i32_0 = arith.constant 0 : i32
    %c0_i32_1 = arith.constant 0 : i32
    return %arg0, %c0_i32, %c0_i32_0 : i32, i32, i32
  }
  func.func @transform_3(%arg0: i32, %arg1: i32) -> (i32, i32, i32) {
    %c0_i32 = arith.constant 0 : i32
    %c0_i32_0 = arith.constant 0 : i32
    %c0_i32_1 = arith.constant 0 : i32
    %c0_i32_2 = arith.constant 0 : i32
    return %c0_i32, %c0_i32_0, %c0_i32_1 : i32, i32, i32
  }
  func.func @transform_4(%arg0: i32, %arg1: i32) -> (i32, i32, i32) {
    %c0_i32 = arith.constant 0 : i32
    %c0_i32_0 = arith.constant 0 : i32
    %c0_i32_1 = arith.constant 0 : i32
    %c0_i32_2 = arith.constant 0 : i32
    return %c0_i32, %c0_i32_0, %c0_i32_1 : i32, i32, i32
  }
  func.func @transform_5(%arg0: i32, %arg1: i32) -> (i32, i32, i32) {
    %c0_i32 = arith.constant 0 : i32
    %c0_i32_0 = arith.constant 0 : i32
    %c0_i32_1 = arith.constant 0 : i32
    %c0_i32_2 = arith.constant 0 : i32
    return %c0_i32, %c0_i32_0, %c0_i32_1 : i32, i32, i32
  }
  func.func @transform_6(%arg0: i32, %arg1: i32) -> (i32, i32, i32) {
    %c0_i32 = arith.constant 0 : i32
    %c0_i32_0 = arith.constant 0 : i32
    %c0_i32_1 = arith.constant 0 : i32
    %c0_i32_2 = arith.constant 0 : i32
    return %c0_i32, %c0_i32_0, %c0_i32_1 : i32, i32, i32
  }
  func.func @transform_7(%arg0: i32, %arg1: i32) -> (i32, i32, i32) {
    %c0_i32 = arith.constant 0 : i32
    %c0_i32_0 = arith.constant 0 : i32
    %c0_i32_1 = arith.constant 0 : i32
    %c0_i32_2 = arith.constant 0 : i32
    return %c0_i32, %c0_i32_0, %c0_i32_1 : i32, i32, i32
  }
  func.func @transform_8(%arg0: i32, %arg1: i32) -> (i32, i32, i32) {
    %c0_i32 = arith.constant 0 : i32
    %c0_i32_0 = arith.constant 0 : i32
    %c0_i32_1 = arith.constant 0 : i32
    %c0_i32_2 = arith.constant 0 : i32
    return %c0_i32, %c0_i32_0, %c0_i32_1 : i32, i32, i32
  }
  func.func @transform_9(%arg0: i32, %arg1: i32) -> (i32, i32, i32) {
    %c0_i32 = arith.constant 0 : i32
    %c0_i32_0 = arith.constant 0 : i32
    %c0_i32_1 = arith.constant 0 : i32
    %c0_i32_2 = arith.constant 0 : i32
    return %c0_i32, %c0_i32_0, %c0_i32_1 : i32, i32, i32
  }
  func.func @transform_10(%arg0: i32, %arg1: i32) -> (i32, i32) {
    %c0_i32 = arith.constant 0 : i32
    %c0_i32_0 = arith.constant 0 : i32
    %c0_i32_1 = arith.constant 0 : i32
    return %c0_i32, %c0_i32_0 : i32, i32
  }
  func.func @transform_11(%arg0: i32, %arg1: i32) -> (i32, i32, i32) {
    %c0_i32 = arith.constant 0 : i32
    %c0_i32_0 = arith.constant 0 : i32
    %c0_i32_1 = arith.constant 0 : i32
    %c0_i32_2 = arith.constant 0 : i32
    return %c0_i32, %c0_i32_0, %c0_i32_1 : i32, i32, i32
  }
  func.func @transform_12(%arg0: i32, %arg1: i32) -> (i32, i32) {
    %c0_i32 = arith.constant 0 : i32
    %c0_i32_0 = arith.constant 0 : i32
    %c0_i32_1 = arith.constant 0 : i32
    return %c0_i32, %c0_i32_0 : i32, i32
  }
  func.func @transform_13(%arg0: i32, %arg1: i32) -> (i32, i32) {
    %c0_i32 = arith.constant 0 : i32
    %c0_i32_0 = arith.constant 0 : i32
    %c0_i32_1 = arith.constant 0 : i32
    return %c0_i32, %c0_i32_0 : i32, i32
  }
  func.func @transform_14(%arg0: i32, %arg1: i32) -> (i32, i32) {
    %c0_i32 = arith.constant 0 : i32
    %c0_i32_0 = arith.constant 0 : i32
    %c0_i32_1 = arith.constant 0 : i32
    return %c0_i32, %c0_i32_0 : i32, i32
  }
  func.func @transform_15(%arg0: i32, %arg1: i32) -> (i32, i32) {
    %c0_i32 = arith.constant 0 : i32
    %c0_i32_0 = arith.constant 0 : i32
    %c0_i32_1 = arith.constant 0 : i32
    return %c0_i32, %c0_i32_0 : i32, i32
  }
  func.func @transform_16(%arg0: i32, %arg1: i32) -> (i32, i32) {
    %c0_i32 = arith.constant 0 : i32
    %c0_i32_0 = arith.constant 0 : i32
    %c0_i32_1 = arith.constant 0 : i32
    return %c0_i32, %c0_i32_0 : i32, i32
  }
  func.func @transform_17(%arg0: i32, %arg1: i32) -> (i32, i32) {
    %c0_i32 = arith.constant 0 : i32
    %c0_i32_0 = arith.constant 0 : i32
    %c0_i32_1 = arith.constant 0 : i32
    return %c0_i32, %c0_i32_0 : i32, i32
  }
  func.func @transform_18(%arg0: i32, %arg1: i32) -> (i32, i32) {
    %c0_i32 = arith.constant 0 : i32
    %c0_i32_0 = arith.constant 0 : i32
    %c0_i32_1 = arith.constant 0 : i32
    return %c0_i32, %c0_i32_0 : i32, i32
  }
  func.func @transform_19(%arg0: i32, %arg1: i32) -> (i32, i32) {
    %c0_i32 = arith.constant 0 : i32
    %c0_i32_0 = arith.constant 0 : i32
    %c0_i32_1 = arith.constant 0 : i32
    return %c0_i32, %c0_i32_0 : i32, i32
  }
  func.func @transform_20(%arg0: i32, %arg1: i32) -> (i32, i32, i32) {
    %c0_i32 = arith.constant 0 : i32
    %c0_i32_0 = arith.constant 0 : i32
    return %arg0, %arg1, %c0_i32 : i32, i32, i32
  }
}

</mosaic_0001>

<bundles_post_ra>
// kernel: tpu_custom_call.1
= control target key start
LH: loop header
LB: loop body
LE: loop exit
PB: predicated region body
PF: predicated region fallthrough
CT: control target
= control target key end

     0   :  { %s5250_s0 = inlined_call_operand.vmem [shape: f32[2,8,32], index: 0, kind: input, shape index: {}]   ;;  %s5251_s1 = inlined_call_operand.vmem [shape: f32[2,8,32], index: 1, kind: input, shape index: {}]   ;;  %s5252_s2 = inlined_call_operand.vmem [shape: f32[2,8,64], index: 2, kind: input, shape index: {}]   ;;  %s5253_s3 = inlined_call_operand.vmem [shape: f32[4,32,8], index: 3, kind: input, shape index: {}]   ;;  %s5254_s4 = inlined_call_operand.vmem [shape: f32[4,1,8], index: 4, kind: input, shape index: {}]   ;;  %s5255_s5 = inlined_call_operand.vmem [shape: f32[4,32,8], index: 5, kind: input, shape index: {}]   ;;  %s5256_s6 = inlined_call_operand.vmem [shape: f32[4,1,8], index: 6, kind: input, shape index: {}]   ;;  %s5257_s7 = inlined_call_operand.vmem [shape: f32[4,64,16], index: 7, kind: input, shape index: {}]   ;;  %s5258_s8 = inlined_call_operand.vmem [shape: f32[4,1,16], index: 8, kind: input, shape index: {}]   ;;  %s5259_s9 = inlined_call_operand.vmem [shape: f32[4,16,32], index: 9, kind: input, shape index: {}]   ;;  %s5260_s10 = inlined_call_operand.vmem [shape: f32[1,32], index: 10, kind: input, shape index: {}]   ;;  %s5261_s11 = inlined_call_operand.vmem [shape: f32[4,1,1], index: 11, kind: input, shape index: {}]   ;;  %s5262_s12 = inlined_call_operand.vmem [shape: f32[1,32], index: 12, kind: input, shape index: {}]   ;;  %s5263_s13 = inlined_call_operand.vmem [shape: f32[1,32], index: 13, kind: input, shape index: {}]   ;;  %s5264_s14 = inlined_call_operand.vmem [shape: f32[32,64], index: 14, kind: input, shape index: {}]   ;;  %s5265_s15 = inlined_call_operand.vmem [shape: f32[1,64], index: 15, kind: input, shape index: {}]   ;;  %s5266_s16 = inlined_call_operand.vmem [shape: f32[64,32], index: 16, kind: input, shape index: {}]   ;;  %s5267_s17 = inlined_call_operand.vmem [shape: f32[1,32], index: 17, kind: input, shape index: {}]   ;;  %s5268_s18 = inlined_call_operand.vmem [shape: f32[1,32], index: 18, kind: input, shape index: {}]   ;;  %s5269_s19 = inlined_call_operand.vmem [shape: f32[1,32], index: 19, kind: input, shape index: {}]   ;;  %s5270_s20 = inlined_call_operand.hbm [shape: f32[2,8,32], index: 20, kind: output, shape index: {}]  }
   0x1   :  { %5281 = sst [smem:[#allocation12_spill]] %s5250_s0 }
   0x2   :  { %5282 = sst [smem:[#allocation13_spill]] %s5251_s1 }
   0x3   :  { %5283 = sst [smem:[#allocation14_spill]] %s5252_s2 }
   0x4   :  { %5284 = sst [smem:[#allocation15_spill]] %s5253_s3 }
   0x5   :  { %5285 = sst [smem:[#allocation16_spill]] %s5254_s4 }
   0x6   :  { %5286 = sst [smem:[#allocation17_spill]] %s5255_s5 }
   0x7   :  { %5287 = sst [smem:[#allocation18_spill]] %s5256_s6 }
   0x8   :  { %5288 = sst [smem:[#allocation19_spill]] %s5268_s18 }
   0x9   :  { %5289 = sst [smem:[#allocation20_spill]] %s5269_s19 }
   0xa   :  { %5290 = sst [smem:[#allocation21_spill]] %s5270_s20 }
   0xb   :  { %25 = vsyncpa [#allocation3], 0 }
   0xc   :  { %27 = vsyncpa [#allocation3 + $0x1], 0  ;;  %s4515_s1 = smov 0   ;;  %s4517_s22 = smov 0  }
   0xd   :  { %s4519_s23 = smov 0   ;;  %s4521_s24 = smov 0  }
   0xe   :  { %s4523_s2 = smov 0   ;;  %s4525_s25 = smov 0  }
   0xf LB: > { %5291 = sst [smem:[#allocation5_spill]] %s4382_s1  ;;  %s3519_s3 = sadd.s32 4294967295, %s4402_s25   ;;  %s4402_s25 = sphi %s4525_s25, %s33_s25   ;;  %s4398_s2 = sphi %s4523_s2, %s5318_s2   ;;  %s4394_s24 = sphi %s4521_s24, %s5317_s24   ;;  %s4390_s23 = sphi %s4519_s23, %s5316_s23   ;;  %s4386_s22 = sphi %s4517_s22, %s5320_s22   ;;  %s4382_s1 = sphi %s4515_s1, %s5319_s1  }
  0x10   : > { %5292 = sst [smem:[#allocation6_spill]] %s4390_s23  ;;  %s3520_s26 = sadd.s32 4294967294, %s4402_s25  }
  0x11   : > { %5293 = sst [smem:[#allocation7_spill]] %s4398_s2  ;;  %s45_s27 = sadd.s32 1, %s4398_s2 }
  0x12   : > { %5294 = sst [smem:[#allocation8_spill]] %s4402_s25  ;;  %s491_s28 = sadd.s32 1, %s4390_s23 }
  0x13   : > { %p47_p0 = scmp.ge.s32.totalorder %s45_s27, 2  ;;  %p501_p1 = scmp.ne.s32.totalorder %s4390_s23, %s4386_s22 }
  0x14   : > { %p502_p2 = scmp.eq.s32.totalorder %s3519_s3, 1  ;;  %p507_p3 = scmp.ne.s32.totalorder %s4386_s22, %s4382_s1 }
  0x15   : > { %s5322_s27 = smov (%p47_p0, %s45_s27), 0  ;;  %p508_p5 = scmp.eq.s32.totalorder %s3520_s26, 1 }
  0x16   : > { %5295 = sst [smem:[#allocation9_spill]] %s5322_s27  ;;  %p4555_p4 = por %p502_p2, %p501_p1 }
  0x17   : > { %s486_s29 = ssub.s32 %s4398_s2, %s5322_s27  ;;  %p3523_p6 = scmp.ge.s32.totalorder %s4402_s25, 1 }
  0x18   : > { %p489_p7 = scmp.eq.s32.totalorder %s486_s29, 0  ;;  %p4562_p8 = por %p508_p5, %p507_p3 }
  0x19   : > { %p601_p9 = scmp.lt.s32.totalorder %s4402_s25, 3 }
  0x1a   : > { %s5297_s30 = scalar_select %p4562_p8, 1, 0 }
  0x1b   : > { %s4568_s0 = scalar_select %p489_p7, %s4390_s23, %s491_s28  }
  0x1c   : > { %5298 = sst [smem:[#allocation10_spill]] %s5297_s30  ;;  %p602_p10 = pnand %p3523_p6, %p601_p9 }
  0x1d   : > { %5299 = sst [smem:[#allocation11_spill]] %s4568_s0  ;;  %s5301_s27 = sld [smem:[#allocation15_spill]] (!%p602_p10)  ;;  %v4404_v3 = vmov (!%p602_p10), 0.0|0.0   ;;  %vm4405_vm0 = vmmov (!%p602_p10), 0   ;;  %v4406_v11 = vmov (!%p602_p10), 0.0   ;;  %v876_v14 = vld [vmem:[%s5257_s7] sm:$0xff] (!%p602_p10)  ;;  %v688_v39 = vlaneseq (!%p602_p10) }
  0x1e   : > { %605 = sbr.rel (%p602_p10) target bundleno = 7250 (0x1c52), region = 100  ;;  %s5300_s5 = sld [smem:[#allocation17_spill]] (!%p602_p10)  ;;  %4072 = vmatprep.subr.bf16.mxu1 (!%p602_p10), %v4404_v3  ;;  %4066 = vmatprep.subr.bf16.mxu0 (!%p602_p10), %v4404_v3  ;;  %v877_v15 = vld [vmem:[%s5257_s7 + $0x8] sm:$0xff] (!%p602_p10)  ;;  %vm718_vm1 = vcmask (!%p602_p10), 261120   ;;  %v878_v19 = vld [vmem:[%s5257_s7 + $0x10] sm:$0xff] (!%p602_p10)  ;;  %v879_v20 = vld [vmem:[%s5257_s7 + $0x18] sm:$0xff] (!%p602_p10) }
  0x1f   : > { %p669_p11 = scmp.lt.s32.totalorder (!%p602_p10), %s4394_s24, 1  ;;  %3803 = vmatprep.mubr.msk.f32.mxu1 (!%p602_p10), %vm4405_vm0, %v4406_v11  ;;  %3792 = vmatprep.mubr.msk.f32.mxu0 (!%p602_p10), %vm4405_vm0, %v4406_v11  ;;  %s5302_s26 = sld [smem:[#allocation13_spill]] (!%p602_p10)  ;;  %v4079_v18 = vpack.c.bf16 (!%p602_p10), %v877_v15, %v876_v14  ;;  %v4082_v21 = vpack.c.bf16 (!%p602_p10), %v879_v20, %v878_v19  ;;  %v880_v22 = vld [vmem:[%s5257_s7 + $0x20] sm:$0xff] (!%p602_p10)  ;;  %v881_v23 = vld [vmem:[%s5257_s7 + $0x28] sm:$0xff] (!%p602_p10)  ;;  %v882_v25 = vld [vmem:[%s5257_s7 + $0x30] sm:$0xff] (!%p602_p10)  ;;  %vm891_vm2 = vcmask (!%p602_p10), 523264  }
  0x20   : > { %s5303_s19 = sld [smem:[#allocation12_spill]] (!%p602_p10)  ;;  %v4085_v24 = vpack.c.bf16 (!%p602_p10), %v881_v23, %v880_v22  ;;  %v883_v26 = vld [vmem:[%s5257_s7 + $0x38] sm:$0xff] (!%p602_p10)  ;;  %s5304_s25 = sld [smem:[#allocation14_spill]] (!%p602_p10)  ;;  %vm965_vm3 = vcmask (!%p602_p10), 64512   ;;  %v4683_v40 = vshrl.u32 (!%p602_p10), %v688_v39, 7  ;;  %v4685_v41 = vand.u32 (!%p602_p10), 127, %v688_v39 }
  0x21   : > { %v4088_v27 = vpack.c.bf16 (!%p602_p10), %v883_v26, %v882_v25  ;;  %s5305_s6 = sld [smem:[#allocation18_spill]] (!%p602_p10)  ;;  %s5306_s20 = sld [smem:[#allocation16_spill]] (!%p602_p10)  ;;  %v4407_v52 = vmov (!%p602_p10), 1.0   ;;  %v1137_v53 = vld [vmem:[%s5261_s11] sm:$0x1] (!%p602_p10)  ;;  %v4408_v54 = vmov (!%p602_p10), 0  }
  0x22   : > { %vm4689_vm4 = vcmp.lt.s32.totalorder (!%p602_p10), %v4685_v41, %v4683_v40  ;;  %vm701_vm5 = vcmp.gt.s32.totalorder (!%p602_p10), %v4683_v40, %v4685_v41  ;;  %4252 = vset.pattern.permute.xlu1 (!%p602_p10), %v4408_v54  ;;  %v1139_v55 = vand.u32 (!%p602_p10), 2147483647, %v1137_v53  ;;  %4253 = vset.pattern.permute.xlu0 (!%p602_p10), %v4408_v54  ;;  %v1138_v60 = vmax.f32 (!%p602_p10), %v1137_v53, 0.0  ;;  %s5310_s21 = sld [smem:[#allocation20_spill]] (!%p602_p10)  ;;  %s3655_s3 = sshll.u32 (!%p602_p10), %s4394_s24, 7 }
  0x23   : > { %v707_v2 = vld [vmem:[%s5301_s27] sm:$0xff] (!%p602_p10)  ;;  %v708_v5 = vld [vmem:[%s5301_s27 + $0x8] sm:$0xff] (!%p602_p10)  ;;  %v709_v9 = vld [vmem:[%s5301_s27 + $0x10] sm:$0xff] (!%p602_p10)  ;;  %vm704_vm8 = vcmp.ne.s32.totalorder (!%p602_p10), %v4683_v40, 0  ;;  %vm1791_vm9 = vcmask (!%p602_p10), 130048  }
  0x24   : > { %v792_v0 = vld [vmem:[%s5300_s5] sm:$0xff] (!%p602_p10)  ;;  %v793_v1 = vld [vmem:[%s5300_s5 + $0x8] sm:$0xff] (!%p602_p10)  ;;  %v794_v6 = vld [vmem:[%s5300_s5 + $0x10] sm:$0xff] (!%p602_p10)  ;;  %v4067_v8 = vpack.c.bf16 (!%p602_p10), %v708_v5, %v707_v2  ;;  %v1140_v56 = vsub.f32 (!%p602_p10), 0.0, %v1139_v55 }
  0x25   : > { %v4073_v4 = vpack.c.bf16 %v793_v1, %v792_v0  ;;  %v795_v7 = vld [vmem:[%s5300_s5 + $0x18] sm:$0xff]  ;;  %s670_s2 = scalar_select %p669_p11, %s4394_s24, 1  ;;  %v4711_v0 = vsub.s32 0, %v4683_v40  ;;  %v3542_v53 = vld [vmem:[%s5301_s27 + $0x20] sm:$0xff]  ;;  %v3543_v54 = vld [vmem:[%s5301_s27 + $0x28] sm:$0xff] }
  0x26   : > { %v710_v10 = vld [vmem:[%s5301_s27 + $0x18] sm:$0xff]  ;;  %v4076_v12 = vpack.c.bf16 %v795_v7, %v794_v6  ;;  %4068 = vmatpush3.bf16.msra.mxu0 %v4067_v8  ;;  %v1141_v57 = vmul.f32 1.442695, %v1140_v56  ;;  %v4717_v6 = vsel %vm4689_vm4, 1.0, %v4406_v11  ;;  %v3535_v7 = vld [vmem:[%s5258_s8] ss:$0 sm:$0xff] }
  0x27   : > { %4074 = vmatpush3.bf16.msra.mxu1 %v4073_v4  ;;  %v4070_v13 = vpack.c.bf16 %v710_v10, %v709_v9  ;;  %4069 = vmatprep.subr.bf16.mxu0 %v4404_v3  ;;  %s4604_s28 = sshll.u32 %s670_s2, 3  ;;  %v3533_v29 = vld [vmem:[%s5305_s6] ss:$0 sm:$0xff]  ;;  %v4763_v56 = vsel %vm704_vm8, 1.0, %v4406_v11  ;;  %s4409_s24 = smov [#allocation2]  }
  0x28   : > { %4075 = vmatprep.subr.bf16.mxu1 %v4404_v3  ;;  %s679_s29 = scalar_lea.vmem %s5302_s26, %s4604_s28  ;;  %s4620_s18 = scalar_lea.vmem %s5303_s19, %s4604_s28  ;;  %v3531_v30 = vld [vmem:[%s5306_s20] ss:$0 sm:$0xff] }
  0x29   : > { %v4622_v16 = vld [vmem:[%s679_s29] sm:$0xff]  ;;  %s4663_s19 = scalar_lea.vmem %s5304_s25, %s4604_s28  ;;  %s666_s26 = sand.u32 1, %s4386_s22  }
  0x2a   : > { %4071 = vmatpush3.bf16.msra.mxu0 %v4070_v13  ;;  %v4625_v17 = vld [vmem:[%s4620_s18] sm:$0xff]  ;;  %v698_v13 = vcvt.s32.f32 %v4685_v41  ;;  %s3524_s29 = sshll.u32 %s666_s26, 3  ;;  %s5309_s25 = sld [smem:[#allocation19_spill]] }
  0x2b   : > { %4077 = vmatpush3.bf16.msra.mxu1 %v4076_v12  ;;  %4078 = vmatprep.subr.bf16.mxu0 %v4404_v3  ;;  %v4666_v28 = vld [vmem:[%s4663_s19] sm:$0xff]  ;;  %v697_v12 = vcvt.s32.f32 %v4683_v40  ;;  %s668_s28 = scalar_lea.vmem [#allocation2], %s3524_s29  ;;  %s3410_s2 = scalar_lea.sflag [#allocation3], %s666_s26 }
  0x2c   : > { %3830 = vmatprep.subr.mxu1 %v4406_v11  ;;  %v3640_v40 = vld [vmem:[%s5261_s11 + $0x3] sm:$0x1]  ;;  %s3424_s1 = sshll.u32 %s668_s28, 4  ;;  %s4328_s29 = sshll.u32 %s4409_s24, 4  ;;  %s5204_s1 = int_to_ptr.vmem [resolvable:$true] %s3424_s1  ;;  %s4329_s29 = int_to_ptr.vmem [resolvable:$false] %s4328_s29 }
  0x2d   : > { %3793 = vmatmul.mubr.msk.f32.vlgmr.msra.gmra.mrb[0].mxu0 %vm718_vm1, %v4625_v17  ;;  %v699_v14 = vsub.f32 %v697_v12, %v698_v13  ;;  %v3562_v12 = vld [vmem:[%s5257_s7 + $0x70] sm:$0xff]  ;;  %v3563_v13 = vld [vmem:[%s5257_s7 + $0x78] sm:$0xff]  ;;  %v2979_v41 = vand.u32 2147483647, %v3640_v40  ;;  %s4324_s23 = scalar_lea.vmem %s5204_s1, 128  ;;  %p4331_p1 = scmp.lt.s32.totalorder %s5204_s1, %s4329_s29 }
  0x2e   : > { %3804 = vmatmul.mubr.msk.f32.vlgmr.msra.gmra.mrb[0].mxu1 %vm718_vm1, %v4622_v16  ;;  %4080 = vmatpush3.bf16.msra.mxu0 %v4079_v18  ;;  %p4325_p12 = scmp.ne.s32.totalorder %s5204_s1, %s4324_s23 }
  0x2f   : > { %3832 = vmatprep.mubr.msk.f32.mxu1 %vm4405_vm0, %v4406_v11  ;;  %3822 = vmatprep.mubr.msk.f32.mxu0 %vm4405_vm0, %v4406_v11  ;;  %v4729_v15 = vand.u32 2147483647, %v699_v14  ;;  %v4112_v14 = vpack.c.bf16 %v3563_v13, %v3562_v12 }
  0x30   : > { %4081 = vmatprep.subr.bf16.mxu0 %v4404_v3  ;;  %3831 = vmatpush3.msk.msra.mxu1 %vm701_vm5, %v4407_v52  ;;  %p4326_p13 = pnand %p4325_p12, %p4555_p4 }
  0x31   : > { %3835 = vmatprep.subr.mxu1 %v4406_v11 }
  0x32   : > { %4083 = vmatpush3.bf16.msra.mxu0 %v4082_v21  ;;  %p4327_p0 = pneg %p4326_p13 }
  0x33   : > { %4084 = vmatprep.subr.bf16.mxu0 %v4404_v3 }
  0x36   : > { %4086 = vmatpush3.bf16.msra.mxu0 %v4085_v24 }
  0x37   : > { %4087 = vmatprep.subr.bf16.mxu0 %v4404_v3 }
  0x3a   : > { %4089 = vmatpush3.bf16.msra.mxu0 %v4088_v27 }
  0x3b   : > { %3825 = vmatprep.subr.mxu0 %v4406_v11 }
  0x3d   : > { %3823 = vmatmul.mubr.msk.f32.vlgmr.msra.gmra.mrb[2].mxu0 %vm891_vm2, %v4666_v28 }
  0x3e   : > { %3827 = vmatprep.mubr.msk.f32.mxu0 %vm4405_vm0, %v4406_v11 }
 0x100   : > { %v788_v34 = vpop.f32.mrb[0].mxu0 }
 0x101   : > { %v872_v31 = vpop.f32.mrb[0].mxu1  ;;  %v789_v35 = vadd.f32 %v3531_v30, %v788_v34  ;;  %v3794_v36 = vpop.f32.mrb[1].mxu0 }
 0x102   : > { %v873_v32 = vadd.f32 %v3533_v29, %v872_v31  ;;  %v3805_v33 = vpop.f32.mrb[1].mxu1 }
 0x104   : > { %3826 = vmatpush3.xpose.msk.msra.mxu0 %vm965_vm3, %v873_v32 }
 0x105   : > { %4096 = vmatprep.subr.bf16.mxu0 %v4404_v3 }
 0x107   : > { %3828 = vmatmul.mubr.msk.f32.vlgmr.msra.gmra.mrb[4].mxu0 %vm965_vm3, %v789_v35 }
 0x108   : > { %3859 = vmatprep.mubr.msk.f32.mxu0 %vm4405_vm0, %v4406_v11 }
 0x110   : > { %v961_v37 = vpop.f32.mrb[2].mxu0 }
 0x111   : > { %v3824_v38 = vpop.f32.mrb[3].mxu0  ;;  %v962_v10 = vadd.f32 %v3535_v7, %v961_v37 }
 0x1da   : > { %v4693_v43 = vpop.f32.mrb[4].mxu0 }
 0x1db   : > { %v3829_v44 = vpop.f32.mrb[5].mxu0  ;;  %v1042_v45 = vsel %vm4689_vm4, %v4693_v43, -1e+32 }
 0x1dc   : > { %v1043_v46 = vsel %vm965_vm3, %v1042_v45, -inf }
 0x1dd   : > { %1044 = vmax.xlane.f32.xlu0 %v1043_v46  ;;  %v3549_v46 = vld [vmem:[%s5300_s5 + $0x20] sm:$0xff] }
 0x26a   : > { %v1045_v47 = vpop.xlane.xlu0 %1044 }
 0x26b   : > { %v1046_v48 = vsub.f32 %v1042_v45, %v1045_v47 }
 0x26d   : > { %v1047_v49 = vmul.f32 1.442695, %v1046_v48  ;;  %v3551_v48 = vld [vmem:[%s5300_s5 + $0x30] sm:$0xff] }
 0x26f   : > { %4254 = vpow2.f32 %v1047_v49  ;;  %v3552_v49 = vld [vmem:[%s5300_s5 + $0x38] sm:$0xff] }
 0x270   : > { %4256 = vpow2.f32 %v1141_v57 }
 0x279   : > { %v4255_v50 = vpop.eup %4254 }
 0x27a   : > { %v1049_v51 = vsel %vm965_vm3, %v4255_v50, 0.0  ;;  %v4257_v58 = vpop.eup %4256 }
 0x27b   : > { %1050 = vadd.xlane.f32.xlu0 %v1049_v51  ;;  %v1143_v59 = vadd.f32 1.0, %v4257_v58  ;;  %v4091_v58 = vpack.c.bf16 %v3543_v54, %v3542_v53 }
 0x27d   : > { %4258 = vlog2.f32 %v1143_v59 }
 0x287   : > { %v4259_v61 = vpop.eup %4258 }
 0x288   : > { %v1145_v62 = vmul.f32 0.6931472, %v4259_v61  ;;  %v3545_v61 = vld [vmem:[%s5301_s27 + $0x38] sm:$0xff] }
 0x28a   : > { %v1146_v63 = vadd.f32 %v1145_v62, %v1138_v60  ;;  %v3544_v60 = vld [vmem:[%s5301_s27 + $0x30] sm:$0xff] }
 0x28b   : > { %v4094_v62 = vpack.c.bf16 %v3545_v61, %v3544_v60 }
 0x28c   : > { %v1147_v1 = vsub.f32 0.0, %v1146_v63  ;;  %v3556_v63 = vld [vmem:[%s5257_s7 + $0x40] sm:$0xff] }
 0x28e   : > { %v1152_v2 = vrot.slane %v1147_v1, %v4711_v0  ;;  %v3557_v1 = vld [vmem:[%s5257_s7 + $0x48] sm:$0xff] }
 0x290   : > { %1154 = vperm.xlu1 %4252, %v1152_v2   ;;  %v4103_v2 = vpack.c.bf16 %v3557_v1, %v3556_v63  ;;  %v3565_v63 = vld [vmem:[%s5258_s8 + $0x1] ss:$0 sm:$0xff] }
 0x308   : > { %v1051_v4 = vpop.xlane.xlu0 %1050 }
 0x309   : > { %4260 = vrcp.f32 %v1051_v4  ;;  %v3558_v4 = vld [vmem:[%s5257_s7 + $0x50] sm:$0xff] }
 0x30f   : > { %v1155_v24 = vpop.permute.xlu1 %1154 }
 0x313   : > { %v4261_v5 = vpop.eup %4260 }
 0x314   : > { %v1053_v8 = vmul.f32 %v4261_v5, %v4255_v50  ;;  %v4100_v50 = vpack.c.bf16 %v3552_v49, %v3551_v48  ;;  %v3559_v5 = vld [vmem:[%s5257_s7 + $0x58] sm:$0xff]  ;;  %v3571_v48 = vld [vmem:[%s5261_s11 + $0x1] sm:$0x1] }
 0x315   : > { %v4106_v7 = vpack.c.bf16 %v3559_v5, %v3558_v4  ;;  %v1678_v49 = vand.u32 2147483647, %v3571_v48 }
 0x316   : > { %v1054_v9 = vmul.f32 %v4717_v6, %v1053_v8  ;;  %v3560_v8 = vld [vmem:[%s5257_s7 + $0x60] sm:$0xff] }
 0x318   : > { %3833 = vmatmul.mubr.msk.f32.vlgmr.msra.gmra.mrb[2].mxu1 %vm965_vm3, %v1054_v9  ;;  %v3561_v9 = vld [vmem:[%s5257_s7 + $0x68] sm:$0xff] }
 0x319   : > { %3836 = vmatpush3.msra.mxu1 %v962_v10  ;;  %3837 = vmatprep.mubr.msk.f32.mxu1 %vm4405_vm0, %v4406_v11  ;;  %v4109_v10 = vpack.c.bf16 %v3561_v9, %v3560_v8 }
 0x31a   : > { %4090 = vmatprep.subr.bf16.mxu1 %v4404_v3 }
 0x3eb   : > { %v1124_v18 = vpop.f32.mrb[2].mxu1 }
 0x3ec   : > { %v1128_v19 = vmul.f32 %v1124_v18, %v4729_v15  ;;  %v3834_v20 = vpop.f32.mrb[3].mxu1  ;;  %v1249_v18 = vld [vmem:[%s5259_s9] sm:$0xff] }
 0x3ee   : > { %v1129_v21 = vmax.f32 %v1128_v19, 0.0  ;;  %v1250_v19 = vld [vmem:[%s5259_s9 + $0x8] sm:$0xff] }
 0x3ef   : > { %v4118_v20 = vpack.c.bf16 %v1250_v19, %v1249_v18 }
 0x3f0   : > { %4262 = vrsqrt.f32 %v1129_v21  ;;  %vm1132_vm6 = vcmp.eq.f32.partialorder %v1129_v21, inf  ;;  %v1135_v25 = vand.u32 2147483648, %v1129_v21  ;;  %vm1134_vm7 = vcmp.eq.f32.partialorder %v1129_v21, 0.0 }
 0x3fa   : > { %v4263_v22 = vpop.eup %4262 }
 0x3fb   : > { %v1131_v23 = vmul.f32 %v4263_v22, %v1129_v21 }
 0x3fd   : > { %v1133_v26 = vsel %vm1132_vm6, %v1129_v21, %v1131_v23  ;;  %v3554_v21 = vld [vmem:[%s5305_s6 + $0x1] ss:$0 sm:$0xff] }
 0x3fe   : > { %v1136_v27 = vsel %vm1134_vm7, %v1135_v25, %v1133_v26 }
 0x3ff   : > { %v1157_v29 = vmul.f32 %v1155_v24, %v1136_v27  ;;  %v3547_v27 = vld [vmem:[%s5306_s20 + $0x1] ss:$0 sm:$0xff] }
 0x401   : > { %v1158_v30 = vmul.f32 1.442695, %v1157_v29 }
 0x403   : > { %4264 = vpow2.f32 %v1158_v30 }
 0x40d   : > { %v4265_v31 = vpop.eup %4264 }
 0x40e   : > { %v1160_v32 = vmax.f32 %v4265_v31, 1e-05 }
 0x410   : > { %v1161_v33 = vmin.f32 %v1160_v32, 100000.0 }
 0x412   : > { %v1162_v34 = vmul.f32 %v1161_v33, %v4693_v43  ;;  %v3550_v43 = vld [vmem:[%s5300_s5 + $0x28] sm:$0xff] }
 0x413   : > { %v4097_v47 = vpack.c.bf16 %v3550_v43, %v3549_v46 }
 0x414   : > { %v1163_v35 = vsel %vm4689_vm4, %v1162_v34, -1e+32 }
 0x415   : > { %v1164_v36 = vsel %vm965_vm3, %v1163_v35, -inf  ;;  %4098 = vmatpush3.bf16.msra.mxu0 %v4097_v47 }
 0x416   : > { %1165 = vmax.xlane.f32.xlu1 %v1164_v36  ;;  %4099 = vmatprep.subr.bf16.mxu0 %v4404_v3 }
 0x419   : > { %4101 = vmatpush3.bf16.msra.mxu0 %v4100_v50  ;;  %v1679_v50 = vsub.f32 0.0, %v1678_v49  ;;  %v3586_v49 = vld [vmem:[%s5300_s5 + $0x50] sm:$0xff] }
 0x41a   : > { %3881 = vmatprep.subr.mxu0 %v4406_v11 }
 0x41c   : > { %3860 = vmatmul.mubr.msk.f32.vlgmr.msra.gmra.mrb[6].mxu0 %vm718_vm1, %v4622_v16 }
 0x41d   : > { %3883 = vmatprep.mubr.msk.f32.mxu0 %vm4405_vm0, %v4406_v11 }
 0x4a3   : > { %v1166_v37 = vpop.xlane.xlu1 %1165 }
 0x4a4   : > { %v1167_v38 = vsub.f32 %v1163_v35, %v1166_v37 }
 0x4a6   : > { %v1168_v39 = vmul.f32 1.442695, %v1167_v38 }
 0x4a8   : > { %4266 = vpow2.f32 %v1168_v39 }
 0x4b2   : > { %v4267_v44 = vpop.eup %4266 }
 0x4b3   : > { %v1170_v45 = vsel %vm965_vm3, %v4267_v44, 0.0 }
 0x4b4   : > { %1171 = vadd.xlane.f32.xlu0 %v1170_v45 }
 0x4ef   : > { %v1413_v22 = vpop.f32.mrb[6].mxu0 }
 0x4f0   : > { %v1414_v23 = vadd.f32 %v3554_v21, %v1413_v22  ;;  %v3861_v24 = vpop.f32.mrb[7].mxu0 }
 0x4f2   : > { %3882 = vmatpush3.xpose.msk.msra.mxu0 %vm965_vm3, %v1414_v23 }
 0x4f3   : > { %3886 = vmatprep.subr.mxu0 %v4406_v11 }
 0x541   : > { %v1172_v51 = vpop.xlane.xlu0 %1171 }
 0x542   : > { %4268 = vrcp.f32 %v1172_v51  ;;  %v1680_v51 = vmul.f32 1.442695, %v1679_v50  ;;  %v3587_v50 = vld [vmem:[%s5300_s5 + $0x58] sm:$0xff] }
 0x54c   : > { %v4269_v55 = vpop.eup %4268 }
 0x54d   : > { %v1174_v57 = vmul.f32 %v4269_v55, %v4267_v44  ;;  %v1677_v55 = vmax.f32 %v3571_v48, 0.0 }
 0x54f   : > { %v1175_v59 = vmul.f32 %v4763_v56, %v1174_v57 }
 0x551   : > { %3838 = vmatmul.mubr.msk.f32.vlgmr.msra.gmra.mrb[4].mxu1 %vm965_vm3, %v1175_v59 }
 0x552   : > { %4092 = vmatpush3.bf16.msra.mxu1 %v4091_v58  ;;  %3848 = vmatprep.mubr.msk.f32.mxu1 %vm4405_vm0, %v4406_v11 }
 0x553   : > { %4093 = vmatprep.subr.bf16.mxu1 %v4404_v3 }
 0x556   : > { %4095 = vmatpush3.bf16.msra.mxu1 %v4094_v62 }
 0x557   : > { %4102 = vmatprep.subr.bf16.mxu1 %v4404_v3 }
 0x559   : > { %3849 = vmatmul.mubr.msk.f32.vlgmr.msra.gmra.mrb[6].mxu1 %vm718_vm1, %v4625_v17 }
 0x55a   : > { %4104 = vmatpush3.bf16.msra.mxu1 %v4103_v2  ;;  %3878 = vmatprep.mubr.msk.f32.mxu1 %vm4405_vm0, %v4406_v11 }
 0x55b   : > { %4105 = vmatprep.subr.bf16.mxu1 %v4404_v3 }
 0x55e   : > { %4107 = vmatpush3.bf16.msra.mxu1 %v4106_v7 }
 0x55f   : > { %4108 = vmatprep.subr.bf16.mxu1 %v4404_v3 }
 0x562   : > { %4110 = vmatpush3.bf16.msra.mxu1 %v4109_v10 }
 0x563   : > { %4111 = vmatprep.subr.bf16.mxu1 %v4404_v3 }
 0x566   : > { %4113 = vmatpush3.bf16.msra.mxu1 %v4112_v14 }
 0x567   : > { %4117 = vmatprep.subr.bf16.mxu1 %v4404_v3 }
 0x569   : > { %3879 = vmatmul.mubr.msk.f32.vlgmr.msra.gmra.mrb[8].mxu1 %vm891_vm2, %v4666_v28 }
 0x56a   : > { %4119 = vmatpush3.bf16.msra.mxu1 %v4118_v20  ;;  %3907 = vmatprep.mubr.msk.f32.mxu1 %vm4405_vm0, %v4406_v11 }
 0x56b   : > { %4126 = vmatprep.subr.bf16.mxu1 %v4404_v3 }
 0x624   : > { %v1245_v25 = vpop.f32.mrb[4].mxu1 }
 0x625   : > { %v3839_v26 = vpop.f32.mrb[5].mxu1  ;;  %3908 = vmatmul.mubr.msk.f32.vlgmr.msra.gmra.mrb[10].mxu1 %vm1791_vm9, %v1245_v25 }
 0x626   : > { %3929 = vmatprep.mubr.msk.f32.mxu1 %vm4405_vm0, %v4406_v11 }
 0x62c   : > { %v1330_v29 = vpop.f32.mrb[6].mxu1 }
 0x62d   : > { %v1331_v30 = vadd.f32 %v3547_v27, %v1330_v29  ;;  %v3850_v31 = vpop.f32.mrb[7].mxu1 }
 0x62f   : > { %3884 = vmatmul.mubr.msk.f32.vlgmr.msra.gmra.mrb[8].mxu0 %vm965_vm3, %v1331_v30 }
 0x630   : > { %3887 = vmatpush3.msk.msra.mxu0 %vm701_vm5, %v4407_v52  ;;  %3888 = vmatprep.mubr.msk.f32.mxu0 %vm4405_vm0, %v4406_v11 }
 0x631   : > { %3891 = vmatprep.subr.mxu0 %v4406_v11 }
 0x63c   : > { %v1500_v32 = vpop.f32.mrb[8].mxu1 }
 0x63d   : > { %v3880_v33 = vpop.f32.mrb[9].mxu1  ;;  %v1501_v4 = vadd.f32 %v3565_v63, %v1500_v32 }
 0x6f8   : > { %v4839_v34 = vpop.f32.mrb[10].mxu1 }
 0x6f9   : > { %v3909_v35 = vpop.f32.mrb[11].mxu1 }
 0x702   : > { %v1576_v36 = vpop.f32.mrb[8].mxu0 }
 0x703   : > { %v3885_v37 = vpop.f32.mrb[9].mxu0  ;;  %v1580_v38 = vsel %vm4689_vm4, %v1576_v36, -1e+32 }
 0x704   : > { %v1581_v39 = vsel %vm965_vm3, %v1580_v38, -inf  ;;  %v3584_v37 = vld [vmem:[%s5300_s5 + $0x40] sm:$0xff] }
 0x705   : > { %1582 = vmax.xlane.f32.xlu0 %v1581_v39 }
 0x792   : > { %v1583_v44 = vpop.xlane.xlu0 %1582 }
 0x793   : > { %v1584_v45 = vsub.f32 %v1580_v38, %v1583_v44  ;;  %v3573_v44 = vld [vmem:[%s5259_s9 + $0x10] sm:$0xff] }
 0x795   : > { %v1585_v46 = vmul.f32 1.442695, %v1584_v45  ;;  %v3574_v45 = vld [vmem:[%s5259_s9 + $0x18] sm:$0xff] }
 0x797   : > { %4270 = vpow2.f32 %v1585_v46 }
 0x798   : > { %4272 = vpow2.f32 %v1680_v51  ;;  %v4130_v51 = vpack.c.bf16 %v3587_v50, %v3586_v49  ;;  %v3594_v49 = vld [vmem:[%s5257_s7 + $0x98] sm:$0xff] }
 0x7a1   : > { %v4271_v43 = vpop.eup %4270 }
 0x7a2   : > { %v1587_v47 = vsel %vm965_vm3, %v4271_v43, 0.0  ;;  %v4273_v53 = vpop.eup %4272 }
 0x7a3   : > { %1588 = vadd.xlane.f32.xlu0 %v1587_v47  ;;  %v1682_v54 = vadd.f32 1.0, %v4273_v53  ;;  %v4115_v47 = vpack.c.bf16 %v3574_v45, %v3573_v44  ;;  %v3577_v53 = vld [vmem:[%s5301_s27 + $0x40] sm:$0xff] }
 0x7a5   : > { %4274 = vlog2.f32 %v1682_v54  ;;  %v3578_v54 = vld [vmem:[%s5301_s27 + $0x48] sm:$0xff] }
 0x7af   : > { %v4275_v57 = vpop.eup %4274 }
 0x7b0   : > { %v1684_v58 = vmul.f32 0.6931472, %v4275_v57  ;;  %v3579_v57 = vld [vmem:[%s5301_s27 + $0x50] sm:$0xff] }
 0x7b2   : > { %v1685_v59 = vadd.f32 %v1684_v58, %v1677_v55  ;;  %v4121_v55 = vpack.c.bf16 %v3578_v54, %v3577_v53  ;;  %v3580_v58 = vld [vmem:[%s5301_s27 + $0x58] sm:$0xff]  ;;  %v3596_v53 = vld [vmem:[%s5257_s7 + $0xa8] sm:$0xff] }
 0x7b4   : > { %v1686_v60 = vsub.f32 0.0, %v1685_v59 }
 0x7b6   : > { %v1691_v61 = vrot.slane %v1686_v60, %v4711_v0 }
 0x7b9   : > { %1693 = vperm.xlu0 %4253, %v1691_v61   ;;  %v4124_v61 = vpack.c.bf16 %v3580_v58, %v3579_v57  ;;  %v3598_v57 = vld [vmem:[%s5257_s7 + $0xb8] sm:$0xff] }
 0x830   : > { %v1589_v62 = vpop.xlane.xlu0 %1588 }
 0x831   : > { %4276 = vrcp.f32 %v1589_v62  ;;  %v3589_v62 = vld [vmem:[%s5305_s6 + $0x2] ss:$0 sm:$0xff] }
 0x838   : > { %v1694_v14 = vpop.permute.xlu0 %1693 }
 0x83b   : > { %v4277_v1 = vpop.eup %4276 }
 0x83c   : > { %v1591_v2 = vmul.f32 %v4277_v1, %v4271_v43 }
 0x83e   : > { %v1592_v5 = vmul.f32 %v4717_v6, %v1591_v2 }
 0x840   : > { %3889 = vmatmul.mubr.msk.f32.vlgmr.msra.gmra.mrb[10].mxu0 %vm965_vm3, %v1592_v5 }
 0x841   : > { %3892 = vmatpush3.msra.mxu0 %v1501_v4  ;;  %3893 = vmatprep.mubr.msk.f32.mxu0 %vm4405_vm0, %v4406_v11 }
 0x842   : > { %4114 = vmatprep.subr.bf16.mxu0 %v4404_v3 }
 0x913   : > { %v1662_v7 = vpop.f32.mrb[10].mxu0 }
 0x914   : > { %v1666_v8 = vmul.f32 %v1662_v7, %v4729_v15  ;;  %v3890_v9 = vpop.f32.mrb[11].mxu0 }
 0x916   : > { %v1667_v10 = vmax.f32 %v1666_v8, 0.0  ;;  %v3582_v8 = vld [vmem:[%s5306_s20 + $0x2] ss:$0 sm:$0xff] }
 0x918   : > { %4278 = vrsqrt.f32 %v1667_v10  ;;  %vm1670_vm10 = vcmp.eq.f32.partialorder %v1667_v10, inf  ;;  %v1673_v18 = vand.u32 2147483648, %v1667_v10  ;;  %vm1672_vm11 = vcmp.eq.f32.partialorder %v1667_v10, 0.0 }
 0x922   : > { %v4279_v12 = vpop.eup %4278 }
 0x923   : > { %v1669_v13 = vmul.f32 %v4279_v12, %v1667_v10 }
 0x925   : > { %v1671_v19 = vsel %vm1670_vm10, %v1667_v10, %v1669_v13 }
 0x926   : > { %v1674_v20 = vsel %vm1672_vm11, %v1673_v18, %v1671_v19  ;;  %v3606_v19 = vld [vmem:[%s5261_s11 + $0x2] sm:$0x1] }
 0x927   : > { %v1696_v21 = vmul.f32 %v1694_v14, %v1674_v20  ;;  %v2365_v20 = vand.u32 2147483647, %v3606_v19 }
 0x929   : > { %v1697_v22 = vmul.f32 1.442695, %v1696_v21  ;;  %v2366_v21 = vsub.f32 0.0, %v2365_v20 }
 0x92b   : > { %4280 = vpow2.f32 %v1697_v22  ;;  %v2367_v22 = vmul.f32 1.442695, %v2366_v21 }
 0x935   : > { %v4281_v23 = vpop.eup %4280 }
 0x936   : > { %v1699_v24 = vmax.f32 %v4281_v23, 1e-05 }
 0x938   : > { %v1700_v25 = vmin.f32 %v1699_v24, 100000.0 }
 0x93a   : > { %v1701_v26 = vmul.f32 %v1700_v25, %v1576_v36  ;;  %v3585_v36 = vld [vmem:[%s5300_s5 + $0x48] sm:$0xff] }
 0x93b   : > { %v4127_v38 = vpack.c.bf16 %v3585_v36, %v3584_v37 }
 0x93c   : > { %v1702_v27 = vsel %vm4689_vm4, %v1701_v26, -1e+32 }
 0x93d   : > { %v1703_v29 = vsel %vm965_vm3, %v1702_v27, -inf  ;;  %4128 = vmatpush3.bf16.msra.mxu1 %v4127_v38 }
 0x93e   : > { %1704 = vmax.xlane.f32.xlu1 %v1703_v29  ;;  %4129 = vmatprep.subr.bf16.mxu1 %v4404_v3 }
 0x941   : > { %4131 = vmatpush3.bf16.msra.mxu1 %v4130_v51  ;;  %v3595_v51 = vld [vmem:[%s5257_s7 + $0xa0] sm:$0xff] }
 0x942   : > { %3951 = vmatprep.subr.mxu1 %v4406_v11  ;;  %v4139_v54 = vpack.c.bf16 %v3596_v53, %v3595_v51 }
 0x944   : > { %3930 = vmatmul.mubr.msk.f32.vlgmr.msra.gmra.mrb[12].mxu1 %vm718_vm1, %v4622_v16 }
 0x945   : > { %3953 = vmatprep.mubr.msk.f32.mxu1 %vm4405_vm0, %v4406_v11 }
 0x9cb   : > { %v1705_v30 = vpop.xlane.xlu1 %1704 }
 0x9cc   : > { %v1706_v31 = vsub.f32 %v1702_v27, %v1705_v30 }
 0x9ce   : > { %v1707_v32 = vmul.f32 1.442695, %v1706_v31 }
 0x9d0   : > { %4282 = vpow2.f32 %v1707_v32  ;;  %v2364_v32 = vmax.f32 %v3606_v19, 0.0 }
 0x9da   : > { %v4283_v33 = vpop.eup %4282 }
 0x9db   : > { %v1709_v35 = vsel %vm965_vm3, %v4283_v33, 0.0 }
 0x9dc   : > { %1710 = vadd.xlane.f32.xlu1 %v1709_v35 }
 0xa17   : > { %v2100_v63 = vpop.f32.mrb[12].mxu1 }
 0xa18   : > { %v2101_v1 = vadd.f32 %v3589_v62, %v2100_v63  ;;  %v3931_v2 = vpop.f32.mrb[13].mxu1 }
 0xa1a   : > { %3952 = vmatpush3.xpose.msk.msra.mxu1 %vm965_vm3, %v2101_v1 }
 0xa1b   : > { %3956 = vmatprep.subr.mxu1 %v4406_v11 }
 0xa69   : > { %v1711_v39 = vpop.xlane.xlu1 %1710 }
 0xa6a   : > { %4284 = vrcp.f32 %v1711_v39 }
 0xa6b   : > { %4286 = vpow2.f32 %v2367_v22 }
 0xa74   : > { %v4285_v46 = vpop.eup %4284 }
 0xa75   : > { %v1713_v43 = vmul.f32 %v4285_v46, %v4283_v33  ;;  %v4287_v23 = vpop.eup %4286  ;;  %v3591_v46 = vld [vmem:[%s5257_s7 + $0x80] sm:$0xff] }
 0xa76   : > { %v2369_v25 = vadd.f32 1.0, %v4287_v23 }
 0xa77   : > { %v1714_v48 = vmul.f32 %v4763_v56, %v1713_v43  ;;  %v3592_v43 = vld [vmem:[%s5257_s7 + $0x88] sm:$0xff] }
 0xa78   : > { %4288 = vlog2.f32 %v2369_v25 }
 0xa79   : > { %3894 = vmatmul.mubr.msk.f32.vlgmr.msra.gmra.mrb[12].mxu0 %vm965_vm3, %v1714_v48  ;;  %v4133_v48 = vpack.c.bf16 %v3592_v43, %v3591_v46  ;;  %v3618_v43 = vld [vmem:[%s5300_s5 + $0x60] sm:$0xff] }
 0xa7a   : > { %4116 = vmatpush3.bf16.msra.mxu0 %v4115_v47  ;;  %3900 = vmatprep.mubr.msk.f32.mxu0 %vm4405_vm0, %v4406_v11  ;;  %v3593_v47 = vld [vmem:[%s5257_s7 + $0x90] sm:$0xff] }
 0xa7b   : > { %4120 = vmatprep.subr.bf16.mxu0 %v4404_v3  ;;  %v4136_v50 = vpack.c.bf16 %v3594_v49, %v3593_v47  ;;  %v3619_v47 = vld [vmem:[%s5300_s5 + $0x68] sm:$0xff]  ;;  %v3620_v49 = vld [vmem:[%s5300_s5 + $0x70] sm:$0xff] }
 0xa82   : > { %v4289_v29 = vpop.eup %4288 }
 0xa83   : > { %v2371_v33 = vmul.f32 0.6931472, %v4289_v29 }
 0xa85   : > { %v2372_v35 = vadd.f32 %v2371_v33, %v2364_v32 }
 0xa87   : > { %v2373_v37 = vsub.f32 0.0, %v2372_v35 }
 0xa89   : > { %v2378_v36 = vrot.slane %v2373_v37, %v4711_v0 }
 0xb4c   : > { %v1784_v59 = vpop.f32.mrb[12].mxu0 }
 0xb4d   : > { %v3895_v60 = vpop.f32.mrb[13].mxu0  ;;  %3901 = vmatmul.mubr.msk.f32.vlgmr.msra.gmra.mrb[14].mxu0 %vm1791_vm9, %v1784_v59 }
 0xb4e   : > { %4122 = vmatpush3.bf16.msra.mxu0 %v4121_v55  ;;  %3918 = vmatprep.mubr.msk.f32.mxu0 %vm4405_vm0, %v4406_v11  ;;  %v3597_v55 = vld [vmem:[%s5257_s7 + $0xb0] sm:$0xff] }
 0xb4f   : > { %4123 = vmatprep.subr.bf16.mxu0 %v4404_v3  ;;  %v4142_v58 = vpack.c.bf16 %v3598_v57, %v3597_v55 }
 0xb52   : > { %4125 = vmatpush3.bf16.msra.mxu0 %v4124_v61 }
 0xb53   : > { %4132 = vmatprep.subr.bf16.mxu0 %v4404_v3 }
 0xb55   : > { %3919 = vmatmul.mubr.msk.f32.vlgmr.msra.gmra.mrb[16].mxu0 %vm718_vm1, %v4625_v17 }
 0xb56   : > { %3948 = vmatprep.mubr.msk.f32.mxu0 %vm4405_vm0, %v4406_v11  ;;  %4134 = vmatpush3.bf16.msra.mxu0 %v4133_v48  ;;  %v4154_v48 = vpack.c.bf16 %v3619_v47, %v3618_v43 }
 0xb57   : > { %4135 = vmatprep.subr.bf16.mxu0 %v4404_v3 }
 0xb5a   : > { %4137 = vmatpush3.bf16.msra.mxu0 %v4136_v50 }
 0xb5b   : > { %4138 = vmatprep.subr.bf16.mxu0 %v4404_v3 }
 0xb5e   : > { %4140 = vmatpush3.bf16.msra.mxu0 %v4139_v54 }
 0xb5f   : > { %4141 = vmatprep.subr.bf16.mxu0 %v4404_v3 }
 0xb62   : > { %4143 = vmatpush3.bf16.msra.mxu0 %v4142_v58 }
 0xb63   : > { %4147 = vmatprep.subr.bf16.mxu0 %v4404_v3 }
 0xb65   : > { %3949 = vmatmul.mubr.msk.f32.vlgmr.msra.gmra.mrb[18].mxu0 %vm891_vm2, %v4666_v28 }
 0xb66   : > { %3981 = vmatprep.mubr.msk.f32.mxu0 %vm4405_vm0, %v4406_v11 }
 0xc20   : > { %v1861_v4 = vpop.f32.mrb[14].mxu0 }
 0xc21   : > { %v4918_v5 = vadd.f32 %v4839_v34, %v1861_v4  ;;  %v3902_v7 = vpop.f32.mrb[15].mxu0 }
 0xc28   : > { %v2017_v9 = vpop.f32.mrb[16].mxu0 }
 0xc29   : > { %v2018_v10 = vadd.f32 %v3582_v8, %v2017_v9  ;;  %v3920_v12 = vpop.f32.mrb[17].mxu0 }
 0xc2b   : > { %3954 = vmatmul.mubr.msk.f32.vlgmr.msra.gmra.mrb[14].mxu1 %vm965_vm3, %v2018_v10 }
 0xc2c   : > { %3957 = vmatpush3.msk.msra.mxu1 %vm701_vm5, %v4407_v52  ;;  %3958 = vmatprep.mubr.msk.f32.mxu1 %vm4405_vm0, %v4406_v11 }
 0xc2d   : > { %3961 = vmatprep.subr.mxu1 %v4406_v11 }
 0xc38   : > { %v2187_v25 = vpop.f32.mrb[18].mxu0 }
 0xcfe   : > { %v4931_v34 = vpop.f32.mrb[14].mxu1 }
 0xcff   : > { %v3955_v13 = vpop.f32.mrb[15].mxu1  ;;  %v2267_v14 = vsel %vm4689_vm4, %v4931_v34, -1e+32 }
 0xd00   : > { %v2268_v18 = vsel %vm965_vm3, %v2267_v14, -inf }
 0xd01   : > { %2269 = vmax.xlane.f32.xlu1 %v2268_v18 }
 0xd8e   : > { %v2270_v24 = vpop.xlane.xlu1 %2269 }
 0xd8f   : > { %v2271_v26 = vsub.f32 %v2267_v14, %v2270_v24 }
 0xd91   : > { %v2272_v27 = vmul.f32 1.442695, %v2271_v26  ;;  %v3600_v26 = vld [vmem:[%s5258_s8 + $0x2] ss:$0 sm:$0xff] }
 0xd93   : > { %4290 = vpow2.f32 %v2272_v27  ;;  %v2188_v27 = vadd.f32 %v3600_v26, %v2187_v25 }
 0xd9d   : > { %v4291_v30 = vpop.eup %4290 }
 0xd9e   : > { %v2274_v31 = vsel %vm965_vm3, %v4291_v30, 0.0 }
 0xd9f   : > { %2275 = vadd.xlane.f32.xlu1 %v2274_v31  ;;  %v3609_v31 = vld [vmem:[%s5259_s9 + $0x28] sm:$0xff] }
 0xdb0   : > { %2380 = vperm.xlu1 %4252, %v2378_v36   ;;  %v3611_v36 = vld [vmem:[%s5301_s27 + $0x60] sm:$0xff] }
 0xe2c   : > { %v2276_v38 = vpop.xlane.xlu1 %2275 }
 0xe2d   : > { %4292 = vrcp.f32 %v2276_v38  ;;  %v3612_v38 = vld [vmem:[%s5301_s27 + $0x68] sm:$0xff] }
 0xe30   : > { %v2381_v7 = vpop.permute.xlu1 %2380 }
 0xe37   : > { %v4293_v39 = vpop.eup %4292 }
 0xe38   : > { %v2278_v44 = vmul.f32 %v4293_v39, %v4291_v30  ;;  %v3608_v30 = vld [vmem:[%s5259_s9 + $0x20] sm:$0xff]  ;;  %v4148_v39 = vpack.c.bf16 %v3612_v38, %v3611_v36  ;;  %v3631_v36 = vld [vmem:[%s5257_s7 + $0xf0] sm:$0xff]  ;;  %v3632_v38 = vld [vmem:[%s5257_s7 + $0xf8] sm:$0xff] }
 0xe39   : > { %v4145_v35 = vpack.c.bf16 %v3609_v31, %v3608_v30  ;;  %v3627_v30 = vld [vmem:[%s5257_s7 + $0xd0] sm:$0xff] }
 0xe3a   : > { %v2279_v45 = vmul.f32 %v4717_v6, %v2278_v44  ;;  %4149 = vmatpush3.bf16.msra.mxu0 %v4148_v39  ;;  %v3613_v44 = vld [vmem:[%s5301_s27 + $0x70] sm:$0xff]  ;;  %v4169_v39 = vpack.c.bf16 %v3632_v38, %v3631_v36  ;;  %v3293_v36 = vld [vmem:[%s5266_s16 + $0x18] sm:$0xff] }
 0xe3b   : > { %4150 = vmatprep.subr.bf16.mxu0 %v4404_v3 }
 0xe3c   : > { %3959 = vmatmul.mubr.msk.f32.vlgmr.msra.gmra.mrb[16].mxu1 %vm965_vm3, %v2279_v45  ;;  %v3614_v45 = vld [vmem:[%s5301_s27 + $0x78] sm:$0xff] }
 0xe3d   : > { %3963 = vmatprep.mubr.msk.f32.mxu1 %vm4405_vm0, %v4406_v11  ;;  %3962 = vmatpush3.msra.mxu1 %v2188_v27  ;;  %v4151_v46 = vpack.c.bf16 %v3614_v45, %v3613_v44  ;;  %v4322_v44 = vld [vmem:[%s4663_s19] sm:$0xff] }
 0xe3e   : > { %4144 = vmatprep.subr.bf16.mxu1 %v4404_v3 }
 0xe3f   : > { %4152 = vmatpush3.bf16.msra.mxu0 %v4151_v46 }
 0xe40   : > { %4159 = vmatprep.subr.bf16.mxu0 %v4404_v3 }
 0xe42   : > { %3982 = vmatmul.mubr.msk.f32.vlgmr.msra.gmra.mrb[20].mxu0 %vm718_vm1, %v4625_v17  ;;  %v3621_v17 = vld [vmem:[%s5300_s5 + $0x78] sm:$0xff]  ;;  %s5311_s5 = sld [smem:[#allocation21_spill]] }
 0xe43   : > { %4011 = vmatprep.mubr.msk.f32.mxu0 %vm4405_vm0, %v4406_v11  ;;  %v4157_v53 = vpack.c.bf16 %v3621_v17, %v3620_v49 }
 0xf0f   : > { %v2349_v59 = vpop.f32.mrb[16].mxu1 }
 0xf10   : > { %v2353_v60 = vmul.f32 %v2349_v59, %v4729_v15  ;;  %v3960_v61 = vpop.f32.mrb[17].mxu1 }
 0xf11   : > { %v3616_v61 = vld [vmem:[%s5306_s20 + $0x3] ss:$0 sm:$0xff] }
 0xf12   : > { %v2354_v62 = vmax.f32 %v2353_v60, 0.0  ;;  %v3623_v60 = vld [vmem:[%s5305_s6 + $0x3] ss:$0 sm:$0xff]  ;;  %s5202_s6 = scalar_lea.hbm %s5311_s5, %s3655_s3 }
 0xf14   : > { %4294 = vrsqrt.f32 %v2354_v62  ;;  %vm2357_vm12 = vcmp.eq.f32.partialorder %v2354_v62, inf  ;;  %v2360_v2 = vand.u32 2147483648, %v2354_v62  ;;  %vm2359_vm13 = vcmp.eq.f32.partialorder %v2354_v62, 0.0 }
 0xf1e   : > { %v4295_v63 = vpop.eup %4294 }
 0xf1f   : > { %v2356_v1 = vmul.f32 %v4295_v63, %v2354_v62 }
 0xf21   : > { %v2358_v4 = vsel %vm2357_vm12, %v2354_v62, %v2356_v1 }
 0xf22   : > { %v2361_v8 = vsel %vm2359_vm13, %v2360_v2, %v2358_v4 }
 0xf23   : > { %v2383_v9 = vmul.f32 %v2381_v7, %v2361_v8 }
 0xf25   : > { %v2384_v10 = vmul.f32 1.442695, %v2383_v9 }
 0xf27   : > { %4296 = vpow2.f32 %v2384_v10 }
 0xf31   : > { %v4297_v28 = vpop.eup %4296 }
 0xf32   : > { %v2386_v12 = vmax.f32 %v4297_v28, 1e-05 }
 0xf34   : > { %v2387_v13 = vmin.f32 %v2386_v12, 100000.0 }
 0xf36   : > { %v2388_v14 = vmul.f32 %v2387_v13, %v4931_v34  ;;  %v3950_v34 = vpop.f32.mrb[19].mxu0 }
 0xf37   : > { %v2631_v54 = vpop.f32.mrb[20].mxu0 }
 0xf38   : > { %v2389_v18 = vsel %vm4689_vm4, %v2388_v14, -1e+32  ;;  %v3983_v55 = vpop.f32.mrb[21].mxu0  ;;  %v2632_v1 = vadd.f32 %v3616_v61, %v2631_v54 }
 0xf39   : > { %v2390_v19 = vsel %vm965_vm3, %v2389_v18, -inf }
 0xf3a   : > { %2391 = vmax.xlane.f32.xlu0 %v2390_v19 }
 0xfc7   : > { %v2392_v20 = vpop.xlane.xlu0 %2391 }
 0xfc8   : > { %v2393_v21 = vsub.f32 %v2389_v18, %v2392_v20  ;;  %v2978_v20 = vmax.f32 %v3640_v40, 0.0  ;;  %v3634_v40 = vld [vmem:[%s5258_s8 + $0x3] ss:$0 sm:$0xff] }
 0xfca   : > { %v2394_v22 = vmul.f32 1.442695, %v2393_v21 }
 0xfcc   : > { %4298 = vpow2.f32 %v2394_v22 }
 0xfd6   : > { %v4299_v23 = vpop.eup %4298 }
 0xfd7   : > { %v2396_v24 = vsel %vm965_vm3, %v4299_v23, 0.0 }
 0xfd8   : > { %2397 = vadd.xlane.f32.xlu1 %v2396_v24 }
0x1065   : > { %v2398_v29 = vpop.xlane.xlu1 %2397 }
0x1066   : > { %4300 = vrcp.f32 %v2398_v29  ;;  %v3625_v29 = vld [vmem:[%s5257_s7 + $0xc0] sm:$0xff] }
0x1070   : > { %v4301_v32 = vpop.eup %4300 }
0x1071   : > { %v2400_v33 = vmul.f32 %v4301_v32, %v4299_v23 }
0x1073   : > { %v2401_v37 = vmul.f32 %v4763_v56, %v2400_v33  ;;  %v3629_v33 = vld [vmem:[%s5257_s7 + $0xe0] sm:$0xff] }
0x1075   : > { %3964 = vmatmul.mubr.msk.f32.vlgmr.msra.gmra.mrb[18].mxu1 %vm965_vm3, %v2401_v37 }
0x1076   : > { %4146 = vmatpush3.bf16.msra.mxu1 %v4145_v35  ;;  %3970 = vmatprep.mubr.msk.f32.mxu1 %vm4405_vm0, %v4406_v11  ;;  %v3630_v35 = vld [vmem:[%s5257_s7 + $0xe8] sm:$0xff] }
0x1077   : > { %4153 = vmatprep.subr.bf16.mxu1 %v4404_v3  ;;  %v4166_v37 = vpack.c.bf16 %v3630_v35, %v3629_v33  ;;  %v3291_v33 = vld [vmem:[%s5266_s16 + $0x8] sm:$0xff]  ;;  %v3292_v35 = vld [vmem:[%s5266_s16 + $0x10] sm:$0xff] }
0x1078   : > { %v4184_v38 = vpack.c.bf16 %v3293_v36, %v3292_v35 }
0x1148   : > { %v2471_v50 = vpop.f32.mrb[18].mxu1 }
0x1149   : > { %v3965_v51 = vpop.f32.mrb[19].mxu1  ;;  %3971 = vmatmul.mubr.msk.f32.vlgmr.msra.gmra.mrb[20].mxu1 %vm1791_vm9, %v2471_v50 }
0x114a   : > { %4155 = vmatpush3.bf16.msra.mxu1 %v4154_v48  ;;  %3992 = vmatprep.mubr.msk.f32.mxu1 %vm4405_vm0, %v4406_v11 }
0x114b   : > { %4156 = vmatprep.subr.bf16.mxu1 %v4404_v3 }
0x114e   : > { %4158 = vmatpush3.bf16.msra.mxu1 %v4157_v53 }
0x114f   : > { %4014 = vmatprep.subr.mxu1 %v4406_v11 }
0x1151   : > { %3993 = vmatmul.mubr.msk.f32.vlgmr.msra.gmra.mrb[22].mxu1 %vm718_vm1, %v4622_v16 }
0x1152   : > { %4016 = vmatprep.mubr.msk.f32.mxu1 %vm4405_vm0, %v4406_v11 }
0x121c   : > { %v2547_v57 = vpop.f32.mrb[20].mxu1 }
0x121d   : > { %v5039_v58 = vadd.f32 %v2547_v57, %v4918_v5  ;;  %v3972_v59 = vpop.f32.mrb[21].mxu1 }
0x1224   : > { %v2714_v62 = vpop.f32.mrb[22].mxu1 }
0x1225   : > { %v2715_v16 = vadd.f32 %v3623_v60, %v2714_v62  ;;  %v3994_v63 = vpop.f32.mrb[23].mxu1 }
0x1227   : > { %4015 = vmatpush3.xpose.msk.msra.mxu1 %vm965_vm3, %v2715_v16 }
0x1228   : > { %4019 = vmatprep.subr.mxu1 %v4406_v11 }
0x122a   : > { %4017 = vmatmul.mubr.msk.f32.vlgmr.msra.gmra.mrb[24].mxu1 %vm965_vm3, %v2632_v1 }
0x122b   : > { %4020 = vmatpush3.msk.msra.mxu1 %vm701_vm5, %v4407_v52  ;;  %4021 = vmatprep.mubr.msk.f32.mxu1 %vm4405_vm0, %v4406_v11  ;;  %v2980_v52 = vsub.f32 0.0, %v2979_v41 }
0x122c   : > { %4024 = vmatprep.subr.mxu1 %v4406_v11 }
0x122d   : > { %v2981_v8 = vmul.f32 1.442695, %v2980_v52  ;;  %v3642_v52 = vld [vmem:[%s5259_s9 + $0x30] sm:$0xff] }
0x122f   : > { %4302 = vpow2.f32 %v2981_v8  ;;  %v3643_v8 = vld [vmem:[%s5259_s9 + $0x38] sm:$0xff] }
0x1239   : > { %v4303_v28 = vpop.eup %4302 }
0x123a   : > { %v2983_v13 = vadd.f32 1.0, %v4303_v28  ;;  %v4172_v28 = vpack.c.bf16 %v3643_v8, %v3642_v52 }
0x12fd   : > { %v5057_v5 = vpop.f32.mrb[24].mxu1 }
0x12fe   : > { %v4018_v2 = vpop.f32.mrb[25].mxu1  ;;  %v2881_v4 = vsel %vm4689_vm4, %v5057_v5, -1e+32 }
0x12ff   : > { %v2882_v7 = vsel %vm965_vm3, %v2881_v4, -inf }
0x1300   : > { %2883 = vmax.xlane.f32.xlu0 %v2882_v7 }
0x138d   : > { %v2884_v9 = vpop.xlane.xlu0 %2883 }
0x138e   : > { %v2885_v10 = vsub.f32 %v2881_v4, %v2884_v9 }
0x1390   : > { %v2886_v12 = vmul.f32 1.442695, %v2885_v10 }
0x1392   : > { %4304 = vpow2.f32 %v2886_v12 }
0x1393   : > { %4306 = vlog2.f32 %v2983_v13 }
0x139c   : > { %v4305_v14 = vpop.eup %4304 }
0x139d   : > { %v2888_v18 = vsel %vm965_vm3, %v4305_v14, 0.0  ;;  %v4307_v19 = vpop.eup %4306 }
0x139e   : > { %2889 = vadd.xlane.f32.xlu0 %v2888_v18  ;;  %v2985_v21 = vmul.f32 0.6931472, %v4307_v19 }
0x13a0   : > { %v2986_v22 = vadd.f32 %v2985_v21, %v2978_v20 }
0x13a2   : > { %v2987_v23 = vsub.f32 0.0, %v2986_v22  ;;  %v4323_v22 = vld [vmem:[%s4620_s18] sm:$0xff] }
0x13a4   : > { %v2992_v24 = vrot.slane %v2987_v23, %v4711_v0  ;;  %v3626_v0 = vld [vmem:[%s5257_s7 + $0xc8] sm:$0xff] }
0x13a5   : > { %v4160_v31 = vpack.c.bf16 %v3626_v0, %v3625_v29  ;;  %v3205_v29 = vld [vmem:[%s5264_s14] sm:$0xff] }
0x13a7   : > { %4161 = vmatpush3.bf16.msra.mxu0 %v4160_v31  ;;  %v3208_v31 = vld [vmem:[%s5264_s14 + $0x18] sm:$0xff] }
0x13a8   : > { %4162 = vmatprep.subr.bf16.mxu0 %v4404_v3 }
0x13b4   : > { %2994 = vperm.xlu0 %4253, %v2992_v24  }
0x142b   : > { %v2890_v25 = vpop.xlane.xlu0 %2889 }
0x142c   : > { %4308 = vrcp.f32 %v2890_v25 }
0x1433   : > { %v2995_v51 = vpop.permute.xlu0 %2994 }
0x1436   : > { %v4309_v26 = vpop.eup %4308 }
0x1437   : > { %v2892_v34 = vmul.f32 %v4309_v26, %v4305_v14 }
0x1439   : > { %v2893_v27 = vmul.f32 %v4717_v6, %v2892_v34  ;;  %v3628_v6 = vld [vmem:[%s5257_s7 + $0xd8] sm:$0xff] }
0x143a   : > { %v4163_v32 = vpack.c.bf16 %v3628_v6, %v3627_v30  ;;  %v3207_v30 = vld [vmem:[%s5264_s14 + $0x10] sm:$0xff] }
0x143b   : > { %4022 = vmatmul.mubr.msk.f32.vlgmr.msra.gmra.mrb[26].mxu1 %vm965_vm3, %v2893_v27  ;;  %v4178_v6 = vpack.c.bf16 %v3208_v31, %v3207_v30 }
0x143c   : > { %4026 = vmatprep.mubr.msk.f32.mxu1 %vm4405_vm0, %v4406_v11  ;;  %4164 = vmatpush3.bf16.msra.mxu0 %v4163_v32  ;;  %v3290_v32 = vld [vmem:[%s5266_s16] sm:$0xff] }
0x143d   : > { %4165 = vmatprep.subr.bf16.mxu0 %v4404_v3 }
0x1440   : > { %4167 = vmatpush3.bf16.msra.mxu0 %v4166_v37  ;;  %v4181_v37 = vpack.c.bf16 %v3291_v33, %v3290_v32 }
0x1441   : > { %4168 = vmatprep.subr.bf16.mxu0 %v4404_v3 }
0x1444   : > { %4170 = vmatpush3.bf16.msra.mxu0 %v4169_v39  ;;  %v3294_v39 = vld [vmem:[%s5266_s16 + $0x20] sm:$0xff] }
0x1445   : > { %4174 = vmatprep.subr.bf16.mxu0 %v4404_v3 }
0x1447   : > { %4012 = vmatmul.mubr.msk.f32.vlgmr.msra.gmra.mrb[22].mxu0 %vm891_vm2, %v4322_v44  ;;  %v3295_v44 = vld [vmem:[%s5266_s16 + $0x28] sm:$0xff] }
0x1448   : > { %4044 = vmatprep.mubr.msk.f32.mxu0 %vm4405_vm0, %v4406_v11 }
0x150e   : > { %v2963_v45 = vpop.f32.mrb[26].mxu1 }
0x150f   : > { %v2967_v46 = vmul.f32 %v2963_v45, %v4729_v15  ;;  %v4023_v43 = vpop.f32.mrb[27].mxu1  ;;  %v4187_v45 = vpack.c.bf16 %v3295_v44, %v3294_v39 }
0x1511   : > { %v2968_v47 = vmax.f32 %v2967_v46, 0.0 }
0x1513   : > { %4310 = vrsqrt.f32 %v2968_v47  ;;  %vm2971_vm14 = vcmp.eq.f32.partialorder %v2968_v47, inf  ;;  %v2974_v17 = vand.u32 2147483648, %v2968_v47  ;;  %vm2973_vm15 = vcmp.eq.f32.partialorder %v2968_v47, 0.0 }
0x151a   : > { %v2801_v7 = vpop.f32.mrb[22].mxu0 }
0x151b   : > { %v2802_v41 = vadd.f32 %v3634_v40, %v2801_v7 }
0x151d   : > { %v4311_v48 = vpop.eup %4310  ;;  %4025 = vmatpush3.msra.mxu1 %v2802_v41 }
0x151e   : > { %v2970_v49 = vmul.f32 %v4311_v48, %v2968_v47  ;;  %4171 = vmatprep.subr.bf16.mxu1 %v4404_v3 }
0x1520   : > { %v2972_v50 = vsel %vm2971_vm14, %v2968_v47, %v2970_v49  ;;  %v3646_v49 = vld [vmem:[%s5262_s12] ss:$0 sm:$0xff] }
0x1521   : > { %v2975_v53 = vsel %vm2973_vm15, %v2974_v17, %v2972_v50  ;;  %v3647_v50 = vld [vmem:[%s5263_s13] ss:$0 sm:$0xff] }
0x1522   : > { %v2997_v54 = vmul.f32 %v2995_v51, %v2975_v53 }
0x1524   : > { %v2998_v55 = vmul.f32 1.442695, %v2997_v54  ;;  %v3297_v54 = vld [vmem:[%s5266_s16 + $0x38] sm:$0xff] }
0x1526   : > { %4312 = vpow2.f32 %v2998_v55 }
0x1530   : > { %v4313_v57 = vpop.eup %4312 }
0x1531   : > { %v3000_v59 = vmax.f32 %v4313_v57, 1e-05  ;;  %v3648_v57 = vld [vmem:[%s5265_s15] ss:$0 sm:$0xff] }
0x1533   : > { %v3001_v60 = vmin.f32 %v3000_v59, 100000.0 }
0x1535   : > { %v3002_v61 = vmul.f32 %v3001_v60, %v5057_v5  ;;  %v4013_v5 = vpop.f32.mrb[23].mxu0 }
0x1537   : > { %v3003_v15 = vsel %vm4689_vm4, %v3002_v61, -1e+32 }
0x1538   : > { %v3004_v62 = vsel %vm965_vm3, %v3003_v15, -inf }
0x1539   : > { %3005 = vmax.xlane.f32.xlu1 %v3004_v62  ;;  %v3650_v62 = vld [vmem:[%s5267_s17] ss:$0 sm:$0xff] }
0x15c6   : > { %v3006_v16 = vpop.xlane.xlu1 %3005 }
0x15c7   : > { %v3007_v63 = vsub.f32 %v3003_v15, %v3006_v16 }
0x15c9   : > { %v3008_v1 = vmul.f32 1.442695, %v3007_v63 }
0x15cb   : > { %4314 = vpow2.f32 %v3008_v1 }
0x15d5   : > { %v4315_v2 = vpop.eup %4314 }
0x15d6   : > { %v3010_v4 = vsel %vm965_vm3, %v4315_v2, 0.0 }
0x15d7   : > { %3011 = vadd.xlane.f32.xlu1 %v3010_v4 }
0x1664   : > { %v3012_v42 = vpop.xlane.xlu1 %3011 }
0x1665   : > { %4316 = vrcp.f32 %v3012_v42 }
0x166f   : > { %v4317_v9 = vpop.eup %4316 }
0x1670   : > { %v3014_v10 = vmul.f32 %v4317_v9, %v4315_v2 }
0x1672   : > { %v3015_v12 = vmul.f32 %v4763_v56, %v3014_v10  ;;  %v3645_v56 = vld [vmem:[%s5260_s10] ss:$0 sm:$0xff] }
0x1674   : > { %4027 = vmatmul.mubr.msk.f32.vlgmr.msra.gmra.mrb[28].mxu1 %vm965_vm3, %v3015_v12 }
0x1675   : > { %4173 = vmatpush3.bf16.msra.mxu1 %v4172_v28  ;;  %4033 = vmatprep.mubr.msk.f32.mxu1 %vm4405_vm0, %v4406_v11  ;;  %v3652_v28 = vld [vmem:[%s5309_s25] ss:$0 sm:$0xff]  ;;  %s4330_s25 = scalar_lea.vmem %s4329_s29, 256 }
0x1676   : > { %4180 = vmatprep.subr.bf16.mxu1 %v4404_v3  ;;  %p4332_p2 = scmp.lt.s32.totalorder %s4330_s25, %s4324_s23 }
0x1678   : > { %p4333_p3 = por %p4332_p2, %p4331_p1 }
0x167a   : > { %p4334_p5 = pnand %p4333_p3, %p4327_p0 }
0x1747   : > { %v3085_v13 = vpop.f32.mrb[28].mxu1 }
0x1748   : > { %v4028_v14 = vpop.f32.mrb[29].mxu1  ;;  %4034 = vmatmul.mubr.msk.f32.vlgmr.msra.gmra.mrb[30].mxu1 %vm1791_vm9, %v3085_v13  ;;  %v3653_v13 = vld [vmem:[%s5310_s21] ss:$0 sm:$0xff] }
0x1749   : > { %4063 = vmatprep.mubr.msk.f32.mxu1 %vm4405_vm0, %v4406_v11  ;;  %4182 = vmatpush3.bf16.msra.mxu1 %v4181_v37 }
0x174a   : > { %4183 = vmatprep.subr.bf16.mxu1 %v4404_v3 }
0x174d   : > { %4185 = vmatpush3.bf16.msra.mxu1 %v4184_v38 }
0x174e   : > { %4186 = vmatprep.subr.bf16.mxu1 %v4404_v3 }
0x1751   : > { %4188 = vmatpush3.bf16.msra.mxu1 %v4187_v45 }
0x1752   : > { %4189 = vmatprep.subr.bf16.mxu1 %v4404_v3 }
0x181b   : > { %v3161_v18 = vpop.f32.mrb[30].mxu1 }
0x181c   : > { %v3165_v19 = vadd.f32 %v3161_v18, %v5039_v58  ;;  %v4035_v20 = vpop.f32.mrb[31].mxu1  ;;  %v3206_v58 = vld [vmem:[%s5264_s14 + $0x8] sm:$0xff] }
0x181d   : > { %v4175_v0 = vpack.c.bf16 %v3206_v58, %v3205_v29 }
0x181e   : > { %v3173_v21 = vadd.f32 %v3645_v56, %v3165_v19 }
0x181f   : > { %4176 = vmatpush3.bf16.msra.mxu0 %v4175_v0 }
0x1820   : > { %v3174_v23 = vadd.f32 %v4323_v22, %v3173_v21  ;;  %4177 = vmatprep.subr.bf16.mxu0 %v4404_v3  ;;  %v3296_v3 = vld [vmem:[%s5266_s16 + $0x30] sm:$0xff] }
0x1821   : > { %v4190_v55 = vpack.c.bf16 %v3297_v54, %v3296_v3 }
0x1822   : > { %v3177_v24 = vsel %vm718_vm1, %v3174_v23, 0.0 }
0x1823   : > { %3178 = vadd.xlane.f32.xlu1 %v3177_v24  ;;  %4179 = vmatpush3.bf16.msra.mxu0 %v4178_v6 }
0x1824   : > { %4191 = vmatpush3.bf16.msra.mxu1 %v4190_v55 }
0x18b0   : > { %v3179_v25 = vpop.xlane.xlu1 %3178 }
0x18b1   : > { %v3181_v26 = vmul.f32 0.03125, %v3179_v25 }
0x18b3   : > { %v3182_v34 = vsub.f32 %v3174_v23, %v3181_v26 }
0x18b5   : > { %v3183_v27 = vmul.f32 %v3182_v34, %v3182_v34 }
0x18b7   : > { %v3184_v11 = vsel %vm718_vm1, %v3183_v27, 0.0 }
0x18b8   : > { %3185 = vadd.xlane.f32.xlu1 %v3184_v11 }
0x1945   : > { %v3186_v46 = vpop.xlane.xlu1 %3185 }
0x1946   : > { %v3187_v43 = vmul.f32 0.03125, %v3186_v46 }
0x1948   : > { %v3188_v47 = vadd.f32 1e-05, %v3187_v43 }
0x194a   : > { %4318 = vrsqrt.f32 %v3188_v47 }
0x1954   : > { %v4319_v48 = vpop.eup %4318 }
0x1955   : > { %v3190_v17 = vmul.f32 %v4319_v48, %v3182_v34 }
0x1957   : > { %v3197_v51 = vmul.f32 %v3646_v49, %v3190_v17 }
0x1959   : > { %v3204_v53 = vadd.f32 %v3647_v50, %v3197_v51 }
0x195b   : > { %4045 = vmatmul.mubr.msk.f32.vlgmr.msra.gmra.mrb[24].mxu0 %vm718_vm1, %v3204_v53 }
0x1a2e   : > { %v3285_v59 = vpop.f32.mrb[24].mxu0 }
0x1a2f   : > { %v3286_v60 = vadd.f32 %v3648_v57, %v3285_v59  ;;  %v4046_v61 = vpop.f32.mrb[25].mxu0 }
0x1a31   : > { %v3289_v15 = vmax.f32 %v3286_v60, 0.0 }
0x1a33   : > { %4064 = vmatmul.mubr.msk.f32.vlgmr.msra.gmra.mrb[32].mxu1 %vm891_vm2, %v3289_v15 }
0x1b06   : > { %v3374_v16 = vpop.f32.mrb[32].mxu1 }
0x1b07   : > { %v3375_v63 = vadd.f32 %v3650_v62, %v3374_v16  ;;  %v4065_v1 = vpop.f32.mrb[33].mxu1 }
0x1b09   : > { %v3378_v2 = vadd.f32 %v3375_v63, %v3204_v53 }
0x1b0b   : > { %v3381_v4 = vsel %vm718_vm1, %v3378_v2, 0.0 }
0x1b0c   : > { %3382 = vadd.xlane.f32.xlu0 %v3381_v4 }
0x1b99   : > { %v3383_v7 = vpop.xlane.xlu0 %3382 }
0x1b9a   : > { %v3384_v40 = vmul.f32 0.03125, %v3383_v7 }
0x1b9c   : > { %v3385_v5 = vsub.f32 %v3378_v2, %v3384_v40 }
0x1b9e   : > { %v3386_v41 = vmul.f32 %v3385_v5, %v3385_v5 }
0x1ba0   : > { %v3387_v42 = vsel %vm718_vm1, %v3386_v41, 0.0 }
0x1ba1   : > { %3388 = vadd.xlane.f32.xlu1 %v3387_v42 }
0x1c2e   : > { %v3389_v52 = vpop.xlane.xlu1 %3388 }
0x1c2f   : > { %v3390_v8 = vmul.f32 0.03125, %v3389_v52 }
0x1c31   : > { %v3391_v9 = vadd.f32 1e-05, %v3390_v8 }
0x1c33   : > { %4320 = vrsqrt.f32 %v3391_v9 }
0x1c3d   : > { %v4321_v10 = vpop.eup %4320 }
0x1c3e   : > { %v3393_v12 = vmul.f32 %v4321_v10, %v3385_v5 }
0x1c40   : > { %v3400_v14 = vmul.f32 %v3652_v28, %v3393_v12 }
0x1c42   : > { %v3407_v18 = vadd.f32 %v3653_v13, %v3400_v14 }
0x1c44   : > { %3408 = vst.msk [vmem:[%s668_s28] sm:$0xff] %vm718_vm1, %v3407_v18 }
0x1c45   : > { %4337 = shalt.err (!%p4334_p5)
}
0x1c46   : > { %s4338_s26 = scalar_lea.hbm %s5202_s6, 128  ;;  %s4342_s21 = scalar_lea.hbm %s5311_s5, 256 }
0x1c47   : > { %p4339_p6 = scmp.ne.s32.totalorder %s5202_s6, %s4338_s26  ;;  %p4343_p10 = scmp.lt.u32.totalorder %s5202_s6, %s5311_s5 }
0x1c48   : > { %p4344_p11 = scmp.lt.u32.totalorder %s4342_s21, %s4338_s26  ;;  %p4346_p13 = scmp.lt.u32.totalorder %s4338_s26, %s5202_s6 }
0x1c49   : > { %p4340_p7 = pnand %p4339_p6, %p4555_p4 }
0x1c4a   : > { %p4345_p12 = por %p4344_p11, %p4343_p10 }
0x1c4b   : > { %p4341_p9 = pneg %p4340_p7 }
0x1c4c   : > { %p4347_p0 = por %p4346_p13, %p4345_p12 }
0x1c4e   : > { %p4348_p1 = pnand %p4347_p0, %p4341_p9 }
0x1c50   : > { %4351 = shalt.err (!%p4348_p1)
}
0x1c51   : > { %4192 = dma.vmem_to_hbm [thread:$0]  (%p4555_p4), %s5204_s1, 128, %s5202_s6, %s3410_s2  }
0x1c52 PF: > { %s5312_s18 = sld [smem:[#allocation8_spill]]  ;;  %s5313_s19 = sld [smem:[#allocation5_spill]] }
0x1c58   : > { %p4198_p2 = scmp.ge.s32.totalorder %s5312_s18, 2  ;;  %s3436_s24 = sand.u32 1, %s5313_s19  }
0x1c59   : > { %s3437_s29 = scalar_lea.sflag [#allocation3], %s3436_s24 }
0x1c5a   : > { %p4195_p3 = pnand %p4198_p2, %p4562_p8 }
0x1c5c   : > { %4377 = dma.done.wait (!%p4195_p3), %s3437_s29, 128  }
0x1c5d   : > { %4379 = vsyncadd (!%p4195_p3), %s3437_s29, 4294967168  ;;  %s33_s25 = sadd.s32 1, %s5312_s18   ;;  %s5315_s26 = sld [smem:[#allocation6_spill]] }
0x1c5e   : > { %p30_p5 = scmp.ge.s32.totalorder %s33_s25, 4   ;;  %s5316_s23 = sld [smem:[#allocation11_spill]] }
0x1c5f   : > { %s5317_s24 = sld [smem:[#allocation7_spill]]  ;;  %s5318_s2 = sld [smem:[#allocation9_spill]] }
0x1c60   : > { %s5319_s1 = smov %s4386_s22  ;;  %32 = sbr.rel (!%p30_p5) target bundleno = 15 (0xf), region = 165 }
0x1c63   : > { %s5320_s22 = smov %s5315_s26 }
0x1c67   :  { %3442 = vsyncpa [#allocation3], 1 }
0x1c68   :  { %3444 = vsyncpa [#allocation3 + $0x1], 1 }

</bundles_post_ra>
